<compile_context>
chip_gen: v7x
topology: tpu7x:2x2x1
jax: 0.10.0
libtpu: 0.0.40
codegen_flags: <defaults>
</compile_context>

<pallas_src>
import functools
import math

import jax
import jax.numpy as jnp
from jax.experimental import pallas as pl
from jax.experimental.pallas import tpu as pltpu

LANE = 128
MATMUL_DTYPE = jnp.bfloat16      # MXU input dtype (fp32 accumulation always)
ACT_DTYPE = jnp.bfloat16         # inter-kernel activation dtype in HBM
EXACT_SOFTMAX = False            # True -> exact divide (fp32 parity tests)


def _rup(n, m=LANE):
    return ((n + m - 1) // m) * m


@functools.lru_cache(maxsize=None)
def _vmem_limit_bytes():
    """Per-generation scoped-VMEM cap: half of physical (64MiB v5e/v6e, 32MiB v7x)."""
    try:
        cap = int(pltpu.get_tpu_info().vmem_capacity_bytes)
    except Exception:
        cap = 64 * 1024 * 1024
    return max(32 * 1024 * 1024, cap // 2)


# ----------------------------------------------------------------------------
# In-kernel helpers
# ----------------------------------------------------------------------------
def _mm(a, b):
    """MXU matmul with MATMUL_DTYPE inputs and fp32 accumulation."""
    return jnp.dot(a.astype(MATMUL_DTYPE), b.astype(MATMUL_DTYPE),
                   preferred_element_type=jnp.float32)


def _activate(x, act):
    if act == "relu":
        return jnp.maximum(x, 0.0)
    if act == "sigmoid":
        return jax.nn.sigmoid(x)
    if act == "tanh":
        return jnp.tanh(x)
    return x


def _shift_down(x, s):
    """result[t] = x[t - s]; zeros for t < s.  (pltpu.roll = XLU, mask = VPU)."""
    T = x.shape[0]
    rolled = pltpu.roll(x, shift=s % T, axis=0)
    t_idx = jax.lax.broadcasted_iota(jnp.int32, x.shape, 0)
    return jnp.where(t_idx >= s, rolled, 0.0)


def _shift_up(x, s):
    """result[t] = x[t + s]; zeros for t >= T - s."""
    T = x.shape[0]
    rolled = pltpu.roll(x, shift=(-s) % T, axis=0)
    t_idx = jax.lax.broadcasted_iota(jnp.int32, x.shape, 0)
    return jnp.where(t_idx < T - s, rolled, 0.0)


def _conv3(h1, w2_ref, b2_ref, pad_mode):
    """3-tap conv over time without materialized im2col.

    One (T,H)@(H,3H) matmul, then the three lane-aligned output thirds are
    row-shifted (roll + iota edge mask) and summed.  Matches per-layer zero
    padding ('causal' or 'same', K=3) of the unfused reference.
    """
    y = _mm(h1, w2_ref[...])                       # (T, 3H) fp32
    H = y.shape[1] // 3
    y0, y1, y2 = y[:, :H], y[:, H:2 * H], y[:, 2 * H:]
    if pad_mode == "causal":                       # out[t] = W0 x[t-2] + W1 x[t-1] + W2 x[t]
        out = _shift_down(y0, 2) + _shift_down(y1, 1) + y2
    else:                                          # "same": W0 x[t-1] + W1 x[t] + W2 x[t+1]
        out = _shift_down(y0, 1) + y1 + _shift_up(y2, 1)
    return out + b2_ref[...]


# ----------------------------------------------------------------------------
# Kernels
# ----------------------------------------------------------------------------
def stack_kernel(x_ref, w1_ref, b1_ref, w2_ref, b2_ref, w3_ref, b3_ref, o_ref,
                 *, pad_mode, act):
    """Fused conv stack: 1x1 -> ReLU -> 3-tap -> ReLU -> 1x1 -> act."""
    x = x_ref[0]                                                   # (T, Cin)
    h1 = jnp.maximum(_mm(x, w1_ref[...]) + b1_ref[...], 0.0)       # (T, H)
    h2 = jnp.maximum(_conv3(h1, w2_ref, b2_ref, pad_mode), 0.0)
    o = _mm(h2, w3_ref[...]) + b3_ref[...]
    o_ref[0] = _activate(o, act).astype(o_ref.dtype)


def attn_kernel(q_ref, kv_ref, r_ref, at_ref, *, scale, c_split):
    """Dot-product attention, (tty, Tx) score orientation.

    q_ref: (1, tty, Cp); kv_ref: (1, Tx, 2*Cp) with K in lanes [0, Cp) and V in
    lanes [Cp, 2*Cp).  The second matmul (P@V) is fully native (no transpose of
    the score matrix); A is stored transposed (Ty, Tx) and flipped once outside.
    """
    q = q_ref[0]                                                   # (tty, Cp)
    kv = kv_ref[0]                                                 # (Tx, 2Cp)
    k = kv[:, :c_split]
    v = kv[:, c_split:]
    s = jax.lax.dot_general(
        q.astype(MATMUL_DTYPE), k.astype(MATMUL_DTYPE),
        dimension_numbers=(((1,), (1,)), ((), ())),
        preferred_element_type=jnp.float32) * scale                # (tty, Tx)
    m = jnp.max(s, axis=-1, keepdims=True)
    e = jnp.exp(s - m)
    denom = jnp.sum(e, axis=-1, keepdims=True)
    if EXACT_SOFTMAX:
        a = e / denom
    else:
        a = e * pl.reciprocal(denom, approx=True)
    at_ref[0] = a.astype(at_ref.dtype)                             # A^T tile
    r = jax.lax.dot_general(
        a.astype(MATMUL_DTYPE), v.astype(MATMUL_DTYPE),
        dimension_numbers=(((1,), (0,)), ((), ())),
        preferred_element_type=jnp.float32)                        # (tty, Cp)
    r_ref[0] = r.astype(r_ref.dtype)


def dec_post_kernel(r_ref, q_ref, f0_ref,
                    fw1_ref, fb1_ref, fw2_ref, fb2_ref,
                    w1a_ref, w1b_ref, w1f_ref, b1_ref,
                    w2_ref, b2_ref, w3_ref, b3_ref,
                    pw1_ref, pb1_ref, pw2_ref, pb2_ref, pw3_ref, pb3_ref,
                    y_ref, p_ref, *, f0_mode):
    """Fused AudioDecoder (+F0Enc, +concat(R,Q) folded into conv0) + PostNet.

    (concat(R,Q) + F) @ W1 == R@W1a + Q@W1b + F@W1 (W1a/W1b = row split of W1).
    PostNet consumes Y directly in VMEM; Y and P are written from one kernel.
    """
    r = r_ref[0]                                                   # (T, Cx_p)
    q = q_ref[0]                                                   # (T, Cx_p)
    acc = _mm(r, w1a_ref[...]) + _mm(q, w1b_ref[...]) + b1_ref[...]
    if f0_mode:
        f0 = f0_ref[0]                                             # (T, 1) fp32
        hf = jnp.maximum(f0 * fw1_ref[...] + fb1_ref[...], 0.0)    # (T, 32)
        fenc = jnp.tanh(_mm(hf, fw2_ref[...]) + fb2_ref[...])      # (T, F0O_p)
        acc = acc + _mm(fenc, w1f_ref[...])
    h1 = jnp.maximum(acc, 0.0)
    h2 = jnp.maximum(_conv3(h1, w2_ref, b2_ref, "causal"), 0.0)
    y = jax.nn.sigmoid(_mm(h2, w3_ref[...]) + b3_ref[...])         # (T, n_mels)
    y_ref[0] = y.astype(y_ref.dtype)
    # PostNet: 1x1 -> ReLU -> 3-tap "same" -> ReLU -> 1x1 -> sigmoid
    g1 = jnp.maximum(_mm(y, pw1_ref[...]) + pb1_ref[...], 0.0)
    g2 = jnp.maximum(_conv3(g1, pw2_ref, pb2_ref, "same"), 0.0)
    p = jax.nn.sigmoid(_mm(g2, pw3_ref[...]) + pb3_ref[...])
    p_ref[0] = p.astype(p_ref.dtype)


# ----------------------------------------------------------------------------
# pallas_call wrappers
# ----------------------------------------------------------------------------
def conv_stack(x, p, *, pad_mode, act, out_dtype):
    """x: (N, T, Cin) -> (N, T, Cout) through one fused pallas_call."""
    N, T, Cin = x.shape
    H = p["w2"].shape[0]
    Cout = p["w3"].shape[1]
    assert p["w1"].shape[0] == Cin, (p["w1"].shape, Cin)
    kern = functools.partial(stack_kernel, pad_mode=pad_mode, act=act)
    return pl.pallas_call(
        kern,
        out_shape=jax.ShapeDtypeStruct((N, T, Cout), out_dtype),
        grid=(N,),
        in_specs=[
            pl.BlockSpec((1, T, Cin), lambda n: (n, 0, 0)),
            pl.BlockSpec((Cin, H), lambda n: (0, 0)),
            pl.BlockSpec((1, H), lambda n: (0, 0)),
            pl.BlockSpec((H, 3 * H), lambda n: (0, 0)),
            pl.BlockSpec((1, H), lambda n: (0, 0)),
            pl.BlockSpec((H, Cout), lambda n: (0, 0)),
            pl.BlockSpec((1, Cout), lambda n: (0, 0)),
        ],
        out_specs=pl.BlockSpec((1, T, Cout), lambda n: (n, 0, 0)),
        compiler_params=pltpu.CompilerParams(
            dimension_semantics=("parallel",),
            vmem_limit_bytes=_vmem_limit_bytes()),
    )(x, p["w1"], p["b1"], p["w2"], p["b2"], p["w3"], p["b3"])


def attention(Q, KV, *, d_hidden):
    """Q: (N, Ty, Cp), KV: (N, Tx, 2*Cp) -> R: (N, Ty, Cp), A^T: (N, Ty, Tx)."""
    N, Ty, Cp = Q.shape
    Tx = KV.shape[1]
    assert KV.shape[2] == 2 * Cp
    tty = Ty
    for cand in (512, 256, 128):          # tile query axis for long Ty
        if Ty % cand == 0:
            tty = cand
            break
    n_t = Ty // tty
    kern = functools.partial(attn_kernel, scale=1.0 / math.sqrt(d_hidden),
                             c_split=Cp)
    # Grid (N, n_t): n_t innermost + constant-in-t KV index map -> KV not re-DMA'd.
    R, A_t = pl.pallas_call(
        kern,
        out_shape=(jax.ShapeDtypeStruct((N, Ty, Cp), ACT_DTYPE),
                   jax.ShapeDtypeStruct((N, Ty, Tx), ACT_DTYPE)),
        grid=(N, n_t),
        in_specs=[
            pl.BlockSpec((1, tty, Cp), lambda n, t: (n, t, 0)),
            pl.BlockSpec((1, Tx, 2 * Cp), lambda n, t: (n, 0, 0)),
        ],
        out_specs=(
            pl.BlockSpec((1, tty, Cp), lambda n, t: (n, t, 0)),
            pl.BlockSpec((1, tty, Tx), lambda n, t: (n, t, 0)),
        ),
        compiler_params=pltpu.CompilerParams(
            dimension_semantics=("parallel", "arbitrary"),
            vmem_limit_bytes=_vmem_limit_bytes()),
    )(Q, KV)
    return R, A_t


def audio_decoder_postnet(R, Q, f0, pd, pp, *, f0_mode):
    """R, Q: (N, T, Cx_p) bf16; f0: (N, T) -> Y, P: (N, T, n_mels) fp32."""
    N, T, Cp = R.shape
    Cy = pd["w1a"].shape[1]
    Mel = pd["w3"].shape[1]
    F0H = pd["fw1"].shape[1]
    F0O = pd["fw2"].shape[1]
    Cxp = pp["w1"].shape[1]
    f0_3d = f0.astype(jnp.float32)[..., None]                      # (N, T, 1)
    kern = functools.partial(dec_post_kernel, f0_mode=f0_mode)
    return pl.pallas_call(
        kern,
        out_shape=(jax.ShapeDtypeStruct((N, T, Mel), jnp.float32),
                   jax.ShapeDtypeStruct((N, T, Mel), jnp.float32)),
        grid=(N,),
        in_specs=[
            pl.BlockSpec((1, T, Cp), lambda n: (n, 0, 0)),         # R
            pl.BlockSpec((1, T, Cp), lambda n: (n, 0, 0)),         # Q
            pl.BlockSpec((1, T, 1), lambda n: (n, 0, 0)),          # f0
            pl.BlockSpec((1, F0H), lambda n: (0, 0)),              # fw1
            pl.BlockSpec((1, F0H), lambda n: (0, 0)),              # fb1
            pl.BlockSpec((F0H, F0O), lambda n: (0, 0)),            # fw2
            pl.BlockSpec((1, F0O), lambda n: (0, 0)),              # fb2
            pl.BlockSpec((Cp, Cy), lambda n: (0, 0)),              # w1a
            pl.BlockSpec((Cp, Cy), lambda n: (0, 0)),              # w1b
            pl.BlockSpec((F0O, Cy), lambda n: (0, 0)),             # w1f
            pl.BlockSpec((1, Cy), lambda n: (0, 0)),               # b1
            pl.BlockSpec((Cy, 3 * Cy), lambda n: (0, 0)),          # w2
            pl.BlockSpec((1, Cy), lambda n: (0, 0)),               # b2
            pl.BlockSpec((Cy, Mel), lambda n: (0, 0)),             # w3
            pl.BlockSpec((1, Mel), lambda n: (0, 0)),              # b3
            pl.BlockSpec((Mel, Cxp), lambda n: (0, 0)),            # pw1
            pl.BlockSpec((1, Cxp), lambda n: (0, 0)),              # pb1
            pl.BlockSpec((Cxp, 3 * Cxp), lambda n: (0, 0)),        # pw2
            pl.BlockSpec((1, Cxp), lambda n: (0, 0)),              # pb2
            pl.BlockSpec((Cxp, Mel), lambda n: (0, 0)),            # pw3
            pl.BlockSpec((1, Mel), lambda n: (0, 0)),              # pb3
        ],
        out_specs=(
            pl.BlockSpec((1, T, Mel), lambda n: (n, 0, 0)),
            pl.BlockSpec((1, T, Mel), lambda n: (n, 0, 0)),
        ),
        compiler_params=pltpu.CompilerParams(
            dimension_semantics=("parallel",),
            vmem_limit_bytes=_vmem_limit_bytes()),
    )(R, Q, f0_3d,
      pd["fw1"], pd["fb1"], pd["fw2"], pd["fb2"],
      pd["w1a"], pd["w1b"], pd["w1f"], pd["b1"],
      pd["w2"], pd["b2"], pd["w3"], pd["b3"],
      pp["w1"], pp["b1"], pp["w2"], pp["b2"], pp["w3"], pp["b3"])


# ----------------------------------------------------------------------------
# Parameter init (deterministic, synthetic; channel dims padded only where the
# activation also needs 128 lanes, matmul-operand weights stored in MATMUL_DTYPE)
# ----------------------------------------------------------------------------
def _pad2d(w, rows, cols, dtype):
    out = jnp.zeros((rows, cols), jnp.float32)
    out = out.at[:w.shape[0], :w.shape[1]].set(w)
    return out.astype(dtype)


def _pad_taps(w2, h, h_p, dtype):
    """(3, h, h) -> (h_p, 3*h_p): tap k occupies lane block [k*h_p, k*h_p + h)."""
    out = jnp.zeros((h_p, 3 * h_p), jnp.float32)
    for k in range(3):
        out = out.at[:h, k * h_p:k * h_p + h].set(w2[k])
    return out.astype(dtype)


def _stack_params(key, cin, hidden, cout, *, pad_cin=False, pad_cout=False):
    k1, k2, k3 = jax.random.split(key, 3)
    w1 = 0.1 * jax.random.normal(k1, (cin, hidden), jnp.float32)
    w2 = 0.1 * jax.random.normal(k2, (3, hidden, hidden), jnp.float32)
    w3 = 0.1 * jax.random.normal(k3, (hidden, cout), jnp.float32)
    cin_p = _rup(cin) if pad_cin else cin
    h_p = _rup(hidden)
    cout_p = _rup(cout) if pad_cout else cout
    return {
        "w1": _pad2d(w1, cin_p, h_p, MATMUL_DTYPE),
        "b1": jnp.zeros((1, h_p), jnp.float32),
        "w2": _pad_taps(w2, hidden, h_p, MATMUL_DTYPE),
        "b2": jnp.zeros((1, h_p), jnp.float32),
        "w3": _pad2d(w3, h_p, cout_p, MATMUL_DTYPE),
        "b3": jnp.zeros((1, cout_p), jnp.float32),
    }


def _text_params(key, ce, cx):
    """TextEncoder stack; final 1x1 laid out so K is lanes [0,Cx), V lanes [Cx_p,Cx_p+Cx)."""
    hidden = 2 * cx
    k1, k2, k3 = jax.random.split(key, 3)
    w1 = 0.1 * jax.random.normal(k1, (ce, hidden), jnp.float32)
    w2 = 0.1 * jax.random.normal(k2, (3, hidden, hidden), jnp.float32)
    w3 = 0.1 * jax.random.normal(k3, (hidden, hidden), jnp.float32)
    h_p, cx_p = _rup(hidden), _rup(cx)
    w3_p = jnp.zeros((h_p, 2 * cx_p), jnp.float32)
    w3_p = w3_p.at[:hidden, :cx].set(w3[:, :cx])                   # K half
    w3_p = w3_p.at[:hidden, cx_p:cx_p + cx].set(w3[:, cx:])        # V half
    return {
        "w1": _pad2d(w1, ce, h_p, MATMUL_DTYPE),
        "b1": jnp.zeros((1, h_p), jnp.float32),
        "w2": _pad_taps(w2, hidden, h_p, MATMUL_DTYPE),
        "b2": jnp.zeros((1, h_p), jnp.float32),
        "w3": w3_p.astype(MATMUL_DTYPE),
        "b3": jnp.zeros((1, 2 * cx_p), jnp.float32),
    }


def _decoder_params(key, cx, cy, n_mels):
    k1, k2, k3, k4, k5 = jax.random.split(key, 5)
    w1 = 0.1 * jax.random.normal(k1, (2 * cx, cy), jnp.float32)
    w2 = 0.1 * jax.random.normal(k2, (3, cy, cy), jnp.float32)
    w3 = 0.1 * jax.random.normal(k3, (cy, n_mels), jnp.float32)
    fw1 = 0.1 * jax.random.normal(k4, (1, 32), jnp.float32)        # F0Enc Linear(1,32)
    fw2 = 0.1 * jax.random.normal(k5, (32, 2 * cx), jnp.float32)   # F0Enc Linear(32,2Cx)
    cx_p, cy_p = _rup(cx), _rup(cy)
    f0h, f0o_p = 32, _rup(2 * cx)
    return {
        "w1a": _pad2d(w1[:cx], cx_p, cy_p, MATMUL_DTYPE),
        "w1b": _pad2d(w1[cx:], cx_p, cy_p, MATMUL_DTYPE),
        "w1f": _pad2d(w1, f0o_p, cy_p, MATMUL_DTYPE),
        "b1": jnp.zeros((1, cy_p), jnp.float32),
        "w2": _pad_taps(w2, cy, cy_p, MATMUL_DTYPE),
        "b2": jnp.zeros((1, cy_p), jnp.float32),
        "w3": _pad2d(w3, cy_p, n_mels, MATMUL_DTYPE),
        "b3": jnp.zeros((1, n_mels), jnp.float32),
        "fw1": fw1,                                                # elementwise, fp32
        "fb1": jnp.zeros((1, f0h), jnp.float32),
        "fw2": _pad2d(fw2, f0h, f0o_p, MATMUL_DTYPE),
        "fb2": jnp.zeros((1, f0o_p), jnp.float32),
    }


def init_params(key, *, vocab, Ce, Cx, Cy, n_mels):
    ks = jax.random.split(key, 5)
    embed = 0.1 * jax.random.normal(ks[0], (vocab, Ce), jnp.float32)
    embed = embed.at[0].set(0.0)                                   # padding_idx = 0
    return {
        "embed": embed.astype(ACT_DTYPE),
        "text": _text_params(ks[1], Ce, Cx),
        "audio_enc": _stack_params(ks[2], n_mels, Cx, Cx, pad_cout=True),
        "audio_dec": _decoder_params(ks[3], Cx, Cy, n_mels),
        "post": _stack_params(ks[4], n_mels, Cx, n_mels),
    }


# ----------------------------------------------------------------------------
# DCTTS forward
# ----------------------------------------------------------------------------
def dctts_forward(params, L_ids, S, f0, *, Cx, n_mels, f0_mode=True):
    """L_ids: (N, Tx) int32, S: (N, Ty, n_mels), f0: (N, Ty).

    Returns (Y, P, A): Y/P (N, Ty, n_mels) fp32, A (N, Tx, Ty) bf16 — matching
    the PyTorch return (Y.transpose(1,2), P.transpose(1,2), A).
    """
    # Embedding lookup (gather) stays in XLA glue.
    Lemb = jnp.take(params["embed"], L_ids, axis=0)                # (N, Tx, Ce) bf16

    KV = conv_stack(Lemb, params["text"], pad_mode="same", act="none",
                    out_dtype=ACT_DTYPE)
    Q = conv_stack(S, params["audio_enc"], pad_mode="causal", act="none",
                   out_dtype=ACT_DTYPE)

    R, A_t = attention(Q, KV, d_hidden=Cx)

    # Fused AudioDecoder (+F0Enc fold) + PostNet: Y never round-trips HBM.
    Y, P = audio_decoder_postnet(R, Q, f0, params["audio_dec"], params["post"],
                                 f0_mode=f0_mode)

    A = jnp.swapaxes(A_t, 1, 2)                                    # (N, Tx, Ty)
    return Y, P, A


# ----------------------------------------------------------------------------
if __name__ == "__main__":
    # Small synthetic config: vocab=16, Ce=32, Cx=32, Cy=32, n_mels=16
    N, Tx, Ty = 2, 8, 8
    vocab, Ce, Cx, Cy, n_mels = 16, 32, 32, 32, 16

    key = jax.random.PRNGKey(0)
    k_par, k_l, k_s, k_f = jax.random.split(key, 4)

    params = init_params(k_par, vocab=vocab, Ce=Ce, Cx=Cx, Cy=Cy, n_mels=n_mels)
    L_ids = jax.random.randint(k_l, (N, Tx), 0, vocab, dtype=jnp.int32)
    S = jax.random.uniform(k_s, (N, Ty, n_mels), dtype=jnp.float32)
    f0 = jax.random.uniform(k_f, (N, Ty), dtype=jnp.float32)

    fwd = jax.jit(functools.partial(dctts_forward, Cx=Cx, n_mels=n_mels,
                                    f0_mode=True))
    Y, P, A = jax.block_until_ready(fwd(params, L_ids, S, f0))

    assert Y.shape == (N, Ty, n_mels)
    assert P.shape == (N, Ty, n_mels)
    assert A.shape == (N, Tx, Ty)
    assert bool(jnp.all(jnp.isfinite(Y)))
    assert bool(jnp.all(jnp.isfinite(P)))
    assert bool(jnp.all(jnp.isfinite(A.astype(jnp.float32))))
    print("KERNEL_OK")
</pallas_src>

<mosaic_0001>
module attributes {stable_mosaic.version = 11 : i64} {
  func.func @attn_kernel(%arg0: i32, %arg1: i32, %arg2: memref<1x8x128xbf16, #tpu.memory_space<vmem>>, %arg3: memref<1x8x256xbf16, #tpu.memory_space<vmem>>, %arg4: memref<1x8x128xbf16, #tpu.memory_space<vmem>>, %arg5: memref<1x8x8xbf16, #tpu.memory_space<vmem>>) attributes {dimension_semantics = [#tpu.dimension_semantics<parallel>, #tpu.dimension_semantics<arbitrary>], iteration_bounds = array<i64: 2, 1>, scalar_prefetch = 0 : i64, scratch_operands = 0 : i64, tpu.core_type = #tpu.core_type<tc>, window_params = [{transform_indices = @transform_0, window_bounds = array<i64: 1, 8, 128>}, {transform_indices = @transform_1, window_bounds = array<i64: 1, 8, 256>}, {transform_indices = @transform_2, window_bounds = array<i64: 1, 8, 128>}, {transform_indices = @transform_3, window_bounds = array<i64: 1, 8, 8>}]} {
    %c0 = arith.constant 0 : index
    %c0_0 = arith.constant 0 : index
    %c0_1 = arith.constant 0 : index
    %0 = vector.load %arg2[%c0, %c0_0, %c0_1] : memref<1x8x128xbf16, #tpu.memory_space<vmem>>, vector<1x8x128xbf16>
    %1 = vector.shape_cast %0 : vector<1x8x128xbf16> to vector<8x128xbf16>
    %c0_2 = arith.constant 0 : index
    %c0_3 = arith.constant 0 : index
    %c0_4 = arith.constant 0 : index
    %2 = vector.load %arg3[%c0_2, %c0_3, %c0_4] : memref<1x8x256xbf16, #tpu.memory_space<vmem>>, vector<1x8x256xbf16>
    %3 = vector.shape_cast %2 : vector<1x8x256xbf16> to vector<8x256xbf16>
    %4 = vector.extract_strided_slice %3 {offsets = [0, 0], sizes = [8, 128], strides = [1, 1]} : vector<8x256xbf16> to vector<8x128xbf16>
    %5 = vector.extract_strided_slice %3 {offsets = [0, 128], sizes = [8, 128], strides = [1, 1]} : vector<8x256xbf16> to vector<8x128xbf16>
    %cst = arith.constant dense<0.000000e+00> : vector<8x8xf32>
    %6 = tpu.matmul %1, %4, %cst {dimension_numbers = #tpu.dot_dimension_numbers<[1], [1], [0], [0], [0, 0, 1, 0], [], []>} : vector<8x128xbf16>, vector<8x128xbf16>, vector<8x8xf32> -> vector<8x8xf32>
    %cst_5 = arith.constant 0.176776692 : f32
    %7 = vector.broadcast %cst_5 : f32 to vector<8x8xf32>
    %8 = arith.mulf %6, %7 : vector<8x8xf32>
    %cst_6 = arith.constant dense<0xFF800000> : vector<8xf32>
    %9 = vector.multi_reduction <maximumf>, %8, %cst_6 [1] : vector<8x8xf32> to vector<8xf32>
    %10 = vector.shape_cast %9 : vector<8xf32> to vector<8x1xf32>
    %11 = vector.broadcast %10 : vector<8x1xf32> to vector<8x8xf32>
    %12 = arith.subf %8, %11 : vector<8x8xf32>
    %13 = math.exp %12 : vector<8x8xf32>
    %cst_7 = arith.constant dense<0.000000e+00> : vector<8xf32>
    %14 = vector.multi_reduction <add>, %13, %cst_7 [1] : vector<8x8xf32> to vector<8xf32>
    %15 = vector.shape_cast %14 : vector<8xf32> to vector<8x1xf32>
    %16 = tpu.reciprocal %15 {approx = true} : vector<8x1xf32> -> vector<8x1xf32>
    %17 = vector.broadcast %16 : vector<8x1xf32> to vector<8x8xf32>
    %18 = arith.mulf %13, %17 : vector<8x8xf32>
    %19 = arith.truncf %18 : vector<8x8xf32> to vector<8x8xbf16>
    %c0_8 = arith.constant 0 : index
    %c0_9 = arith.constant 0 : index
    %c0_10 = arith.constant 0 : index
    %20 = vector.load %arg5[%c0_8, %c0_9, %c0_10] : memref<1x8x8xbf16, #tpu.memory_space<vmem>>, vector<1x8x8xbf16>
    %21 = vector.shape_cast %20 : vector<1x8x8xbf16> to vector<8x8xbf16>
    %22 = vector.shape_cast %19 : vector<8x8xbf16> to vector<1x8x8xbf16>
    tpu.vector_store %arg5[%c0_8, %c0_9, %c0_10], %22 {strides = array<i32>} : memref<1x8x8xbf16, #tpu.memory_space<vmem>>, vector<1x8x8xbf16>,
    %23 = arith.truncf %18 : vector<8x8xf32> to vector<8x8xbf16>
    %cst_11 = arith.constant dense<0.000000e+00> : vector<8x128xf32>
    %24 = tpu.matmul %23, %5, %cst_11 {dimension_numbers = #tpu.dot_dimension_numbers<[1], [0], [0], [1], [0, 0, 1, 1], [], []>} : vector<8x8xbf16>, vector<8x128xbf16>, vector<8x128xf32> -> vector<8x128xf32>
    %25 = arith.truncf %24 : vector<8x128xf32> to vector<8x128xbf16>
    %c0_12 = arith.constant 0 : index
    %c0_13 = arith.constant 0 : index
    %c0_14 = arith.constant 0 : index
    %26 = vector.load %arg4[%c0_12, %c0_13, %c0_14] : memref<1x8x128xbf16, #tpu.memory_space<vmem>>, vector<1x8x128xbf16>
    %27 = vector.shape_cast %26 : vector<1x8x128xbf16> to vector<8x128xbf16>
    %28 = vector.shape_cast %25 : vector<8x128xbf16> to vector<1x8x128xbf16>
    tpu.vector_store %arg4[%c0_12, %c0_13, %c0_14], %28 {strides = array<i32>} : memref<1x8x128xbf16, #tpu.memory_space<vmem>>, vector<1x8x128xbf16>,
    return
  }
  func.func @transform_0(%arg0: i32, %arg1: i32) -> (i32, i32, i32) {
    %c0_i32 = arith.constant 0 : i32
    %c0_i32_0 = arith.constant 0 : i32
    return %arg0, %arg1, %c0_i32 : i32, i32, i32
  }
  func.func @transform_1(%arg0: i32, %arg1: i32) -> (i32, i32, i32) {
    %c0_i32 = arith.constant 0 : i32
    %c0_i32_0 = arith.constant 0 : i32
    %c0_i32_1 = arith.constant 0 : i32
    return %arg0, %c0_i32, %c0_i32_0 : i32, i32, i32
  }
  func.func @transform_2(%arg0: i32, %arg1: i32) -> (i32, i32, i32) {
    %c0_i32 = arith.constant 0 : i32
    %c0_i32_0 = arith.constant 0 : i32
    return %arg0, %arg1, %c0_i32 : i32, i32, i32
  }
  func.func @transform_3(%arg0: i32, %arg1: i32) -> (i32, i32, i32) {
    %c0_i32 = arith.constant 0 : i32
    %c0_i32_0 = arith.constant 0 : i32
    return %arg0, %arg1, %c0_i32 : i32, i32, i32
  }
}

module attributes {stable_mosaic.version = 11 : i64} {
  func.func @stack_kernel(%arg0: i32, %arg1: memref<1x8x16xf32, #tpu.memory_space<vmem>>, %arg2: memref<16x128xbf16, #tpu.memory_space<vmem>>, %arg3: memref<1x128xf32, #tpu.memory_space<vmem>>, %arg4: memref<128x384xbf16, #tpu.memory_space<vmem>>, %arg5: memref<1x128xf32, #tpu.memory_space<vmem>>, %arg6: memref<128x128xbf16, #tpu.memory_space<vmem>>, %arg7: memref<1x128xf32, #tpu.memory_space<vmem>>, %arg8: memref<1x8x128xbf16, #tpu.memory_space<vmem>>) attributes {dimension_semantics = [#tpu.dimension_semantics<parallel>], iteration_bounds = array<i64: 2>, scalar_prefetch = 0 : i64, scratch_operands = 0 : i64, tpu.core_type = #tpu.core_type<tc>, window_params = [{transform_indices = @transform_0, window_bounds = array<i64: 1, 8, 16>}, {pipeline_mode = #tpu.pipeline_mode<synchronous>, transform_indices = @transform_1, window_bounds = array<i64: 16, 128>}, {pipeline_mode = #tpu.pipeline_mode<synchronous>, transform_indices = @transform_2, window_bounds = array<i64: 1, 128>}, {pipeline_mode = #tpu.pipeline_mode<synchronous>, transform_indices = @transform_3, window_bounds = array<i64: 128, 384>}, {pipeline_mode = #tpu.pipeline_mode<synchronous>, transform_indices = @transform_4, window_bounds = array<i64: 1, 128>}, {pipeline_mode = #tpu.pipeline_mode<synchronous>, transform_indices = @transform_5, window_bounds = array<i64: 128, 128>}, {pipeline_mode = #tpu.pipeline_mode<synchronous>, transform_indices = @transform_6, window_bounds = array<i64: 1, 128>}, {transform_indices = @transform_7, window_bounds = array<i64: 1, 8, 128>}]} {
    %c0 = arith.constant 0 : index
    %c0_0 = arith.constant 0 : index
    %c0_1 = arith.constant 0 : index
    %0 = vector.load %arg1[%c0, %c0_0, %c0_1] : memref<1x8x16xf32, #tpu.memory_space<vmem>>, vector<1x8x16xf32>
    %1 = vector.shape_cast %0 : vector<1x8x16xf32> to vector<8x16xf32>
    %c0_2 = arith.constant 0 : index
    %c0_3 = arith.constant 0 : index
    %2 = vector.load %arg2[%c0_2, %c0_3] : memref<16x128xbf16, #tpu.memory_space<vmem>>, vector<16x128xbf16>
    %3 = arith.truncf %1 : vector<8x16xf32> to vector<8x16xbf16>
    %cst = arith.constant dense<0.000000e+00> : vector<8x128xf32>
    %4 = tpu.matmul %3, %2, %cst {dimension_numbers = #tpu.dot_dimension_numbers<[1], [0], [0], [1], [0, 0, 1, 1], [], []>} : vector<8x16xbf16>, vector<16x128xbf16>, vector<8x128xf32> -> vector<8x128xf32>
    %c0_4 = arith.constant 0 : index
    %c0_5 = arith.constant 0 : index
    %5 = vector.load %arg3[%c0_4, %c0_5] : memref<1x128xf32, #tpu.memory_space<vmem>>, vector<1x128xf32>
    %6 = vector.broadcast %5 : vector<1x128xf32> to vector<8x128xf32>
    %7 = arith.addf %4, %6 : vector<8x128xf32>
    %cst_6 = arith.constant 0.000000e+00 : f32
    %8 = vector.broadcast %cst_6 : f32 to vector<8x128xf32>
    %9 = arith.maximumf %7, %8 : vector<8x128xf32>
    %c0_7 = arith.constant 0 : index
    %c0_8 = arith.constant 0 : index
    %10 = vector.load %arg4[%c0_7, %c0_8] : memref<128x384xbf16, #tpu.memory_space<vmem>>, vector<128x384xbf16>
    %11 = arith.truncf %9 : vector<8x128xf32> to vector<8x128xbf16>
    %cst_9 = arith.constant dense<0.000000e+00> : vector<8x384xf32>
    %12 = tpu.matmul %11, %10, %cst_9 {dimension_numbers = #tpu.dot_dimension_numbers<[1], [0], [0], [1], [0, 0, 1, 1], [], []>} : vector<8x128xbf16>, vector<128x384xbf16>, vector<8x384xf32> -> vector<8x384xf32>
    %13 = vector.extract_strided_slice %12 {offsets = [0, 0], sizes = [8, 128], strides = [1, 1]} : vector<8x384xf32> to vector<8x128xf32>
    %14 = vector.extract_strided_slice %12 {offsets = [0, 128], sizes = [8, 128], strides = [1, 1]} : vector<8x384xf32> to vector<8x128xf32>
    %15 = vector.extract_strided_slice %12 {offsets = [0, 256], sizes = [8, 128], strides = [1, 1]} : vector<8x384xf32> to vector<8x128xf32>
    %c2_i32 = arith.constant 2 : i32
    %16 = tpu.dynamic_rotate %13 by %c2_i32 dim 0 : vector<8x128xf32>, i32 -> vector<8x128xf32>
    %17 = tpu.iota {dimensions = array<i32: 0>} : vector<8x128xi32>
    %c2_i32_10 = arith.constant 2 : i32
    %18 = vector.broadcast %c2_i32_10 : i32 to vector<8x128xi32>
    %19 = arith.cmpi sge, %17, %18 : vector<8x128xi32>
    %cst_11 = arith.constant 0.000000e+00 : f32
    %20 = vector.broadcast %cst_11 : f32 to vector<8x128xf32>
    %21 = arith.select %19, %16, %20 : vector<8x128xi1>, vector<8x128xf32>
    %c1_i32 = arith.constant 1 : i32
    %22 = tpu.dynamic_rotate %14 by %c1_i32 dim 0 : vector<8x128xf32>, i32 -> vector<8x128xf32>
    %23 = tpu.iota {dimensions = array<i32: 0>} : vector<8x128xi32>
    %c1_i32_12 = arith.constant 1 : i32
    %24 = vector.broadcast %c1_i32_12 : i32 to vector<8x128xi32>
    %25 = arith.cmpi sge, %23, %24 : vector<8x128xi32>
    %cst_13 = arith.constant 0.000000e+00 : f32
    %26 = vector.broadcast %cst_13 : f32 to vector<8x128xf32>
    %27 = arith.select %25, %22, %26 : vector<8x128xi1>, vector<8x128xf32>
    %28 = arith.addf %21, %27 : vector<8x128xf32>
    %29 = arith.addf %28, %15 : vector<8x128xf32>
    %c0_14 = arith.constant 0 : index
    %c0_15 = arith.constant 0 : index
    %30 = vector.load %arg5[%c0_14, %c0_15] : memref<1x128xf32, #tpu.memory_space<vmem>>, vector<1x128xf32>
    %31 = vector.broadcast %30 : vector<1x128xf32> to vector<8x128xf32>
    %32 = arith.addf %29, %31 : vector<8x128xf32>
    %cst_16 = arith.constant 0.000000e+00 : f32
    %33 = vector.broadcast %cst_16 : f32 to vector<8x128xf32>
    %34 = arith.maximumf %32, %33 : vector<8x128xf32>
    %c0_17 = arith.constant 0 : index
    %c0_18 = arith.constant 0 : index
    %35 = vector.load %arg6[%c0_17, %c0_18] : memref<128x128xbf16, #tpu.memory_space<vmem>>, vector<128x128xbf16>
    %36 = arith.truncf %34 : vector<8x128xf32> to vector<8x128xbf16>
    %cst_19 = arith.constant dense<0.000000e+00> : vector<8x128xf32>
    %37 = tpu.matmul %36, %35, %cst_19 {dimension_numbers = #tpu.dot_dimension_numbers<[1], [0], [0], [1], [0, 0, 1, 1], [], []>} : vector<8x128xbf16>, vector<128x128xbf16>, vector<8x128xf32> -> vector<8x128xf32>
    %c0_20 = arith.constant 0 : index
    %c0_21 = arith.constant 0 : index
    %38 = vector.load %arg7[%c0_20, %c0_21] : memref<1x128xf32, #tpu.memory_space<vmem>>, vector<1x128xf32>
    %39 = vector.broadcast %38 : vector<1x128xf32> to vector<8x128xf32>
    %40 = arith.addf %37, %39 : vector<8x128xf32>
    %41 = arith.truncf %40 : vector<8x128xf32> to vector<8x128xbf16>
    %c0_22 = arith.constant 0 : index
    %c0_23 = arith.constant 0 : index
    %c0_24 = arith.constant 0 : index
    %42 = vector.load %arg8[%c0_22, %c0_23, %c0_24] : memref<1x8x128xbf16, #tpu.memory_space<vmem>>, vector<1x8x128xbf16>
    %43 = vector.shape_cast %42 : vector<1x8x128xbf16> to vector<8x128xbf16>
    %44 = vector.shape_cast %41 : vector<8x128xbf16> to vector<1x8x128xbf16>
    tpu.vector_store %arg8[%c0_22, %c0_23, %c0_24], %44 {strides = array<i32>} : memref<1x8x128xbf16, #tpu.memory_space<vmem>>, vector<1x8x128xbf16>,
    return
  }
  func.func @transform_0(%arg0: i32) -> (i32, i32, i32) {
    %c0_i32 = arith.constant 0 : i32
    %c0_i32_0 = arith.constant 0 : i32
    %c0_i32_1 = arith.constant 0 : i32
    return %arg0, %c0_i32, %c0_i32_0 : i32, i32, i32
  }
  func.func @transform_1(%arg0: i32) -> (i32, i32) {
    %c0_i32 = arith.constant 0 : i32
    %c0_i32_0 = arith.constant 0 : i32
    %c0_i32_1 = arith.constant 0 : i32
    return %c0_i32, %c0_i32_0 : i32, i32
  }
  func.func @transform_2(%arg0: i32) -> (i32, i32) {
    %c0_i32 = arith.constant 0 : i32
    %c0_i32_0 = arith.constant 0 : i32
    %c0_i32_1 = arith.constant 0 : i32
    return %c0_i32, %c0_i32_0 : i32, i32
  }
  func.func @transform_3(%arg0: i32) -> (i32, i32) {
    %c0_i32 = arith.constant 0 : i32
    %c0_i32_0 = arith.constant 0 : i32
    %c0_i32_1 = arith.constant 0 : i32
    return %c0_i32, %c0_i32_0 : i32, i32
  }
  func.func @transform_4(%arg0: i32) -> (i32, i32) {
    %c0_i32 = arith.constant 0 : i32
    %c0_i32_0 = arith.constant 0 : i32
    %c0_i32_1 = arith.constant 0 : i32
    return %c0_i32, %c0_i32_0 : i32, i32
  }
  func.func @transform_5(%arg0: i32) -> (i32, i32) {
    %c0_i32 = arith.constant 0 : i32
    %c0_i32_0 = arith.constant 0 : i32
    %c0_i32_1 = arith.constant 0 : i32
    return %c0_i32, %c0_i32_0 : i32, i32
  }
  func.func @transform_6(%arg0: i32) -> (i32, i32) {
    %c0_i32 = arith.constant 0 : i32
    %c0_i32_0 = arith.constant 0 : i32
    %c0_i32_1 = arith.constant 0 : i32
    return %c0_i32, %c0_i32_0 : i32, i32
  }
  func.func @transform_7(%arg0: i32) -> (i32, i32, i32) {
    %c0_i32 = arith.constant 0 : i32
    %c0_i32_0 = arith.constant 0 : i32
    %c0_i32_1 = arith.constant 0 : i32
    return %arg0, %c0_i32, %c0_i32_0 : i32, i32, i32
  }
}

module attributes {stable_mosaic.version = 11 : i64} {
  func.func @stack_kernel(%arg0: i32, %arg1: memref<1x8x32xbf16, #tpu.memory_space<vmem>>, %arg2: memref<32x128xbf16, #tpu.memory_space<vmem>>, %arg3: memref<1x128xf32, #tpu.memory_space<vmem>>, %arg4: memref<128x384xbf16, #tpu.memory_space<vmem>>, %arg5: memref<1x128xf32, #tpu.memory_space<vmem>>, %arg6: memref<128x256xbf16, #tpu.memory_space<vmem>>, %arg7: memref<1x256xf32, #tpu.memory_space<vmem>>, %arg8: memref<1x8x256xbf16, #tpu.memory_space<vmem>>) attributes {dimension_semantics = [#tpu.dimension_semantics<parallel>], iteration_bounds = array<i64: 2>, scalar_prefetch = 0 : i64, scratch_operands = 0 : i64, tpu.core_type = #tpu.core_type<tc>, window_params = [{transform_indices = @transform_0, window_bounds = array<i64: 1, 8, 32>}, {pipeline_mode = #tpu.pipeline_mode<synchronous>, transform_indices = @transform_1, window_bounds = array<i64: 32, 128>}, {pipeline_mode = #tpu.pipeline_mode<synchronous>, transform_indices = @transform_2, window_bounds = array<i64: 1, 128>}, {pipeline_mode = #tpu.pipeline_mode<synchronous>, transform_indices = @transform_3, window_bounds = array<i64: 128, 384>}, {pipeline_mode = #tpu.pipeline_mode<synchronous>, transform_indices = @transform_4, window_bounds = array<i64: 1, 128>}, {pipeline_mode = #tpu.pipeline_mode<synchronous>, transform_indices = @transform_5, window_bounds = array<i64: 128, 256>}, {pipeline_mode = #tpu.pipeline_mode<synchronous>, transform_indices = @transform_6, window_bounds = array<i64: 1, 256>}, {transform_indices = @transform_7, window_bounds = array<i64: 1, 8, 256>}]} {
    %c0 = arith.constant 0 : index
    %c0_0 = arith.constant 0 : index
    %c0_1 = arith.constant 0 : index
    %0 = vector.load %arg1[%c0, %c0_0, %c0_1] : memref<1x8x32xbf16, #tpu.memory_space<vmem>>, vector<1x8x32xbf16>
    %1 = vector.shape_cast %0 : vector<1x8x32xbf16> to vector<8x32xbf16>
    %c0_2 = arith.constant 0 : index
    %c0_3 = arith.constant 0 : index
    %2 = vector.load %arg2[%c0_2, %c0_3] : memref<32x128xbf16, #tpu.memory_space<vmem>>, vector<32x128xbf16>
    %cst = arith.constant dense<0.000000e+00> : vector<8x128xf32>
    %3 = tpu.matmul %1, %2, %cst {dimension_numbers = #tpu.dot_dimension_numbers<[1], [0], [0], [1], [0, 0, 1, 1], [], []>} : vector<8x32xbf16>, vector<32x128xbf16>, vector<8x128xf32> -> vector<8x128xf32>
    %c0_4 = arith.constant 0 : index
    %c0_5 = arith.constant 0 : index
    %4 = vector.load %arg3[%c0_4, %c0_5] : memref<1x128xf32, #tpu.memory_space<vmem>>, vector<1x128xf32>
    %5 = vector.broadcast %4 : vector<1x128xf32> to vector<8x128xf32>
    %6 = arith.addf %3, %5 : vector<8x128xf32>
    %cst_6 = arith.constant 0.000000e+00 : f32
    %7 = vector.broadcast %cst_6 : f32 to vector<8x128xf32>
    %8 = arith.maximumf %6, %7 : vector<8x128xf32>
    %c0_7 = arith.constant 0 : index
    %c0_8 = arith.constant 0 : index
    %9 = vector.load %arg4[%c0_7, %c0_8] : memref<128x384xbf16, #tpu.memory_space<vmem>>, vector<128x384xbf16>
    %10 = arith.truncf %8 : vector<8x128xf32> to vector<8x128xbf16>
    %cst_9 = arith.constant dense<0.000000e+00> : vector<8x384xf32>
    %11 = tpu.matmul %10, %9, %cst_9 {dimension_numbers = #tpu.dot_dimension_numbers<[1], [0], [0], [1], [0, 0, 1, 1], [], []>} : vector<8x128xbf16>, vector<128x384xbf16>, vector<8x384xf32> -> vector<8x384xf32>
    %12 = vector.extract_strided_slice %11 {offsets = [0, 0], sizes = [8, 128], strides = [1, 1]} : vector<8x384xf32> to vector<8x128xf32>
    %13 = vector.extract_strided_slice %11 {offsets = [0, 128], sizes = [8, 128], strides = [1, 1]} : vector<8x384xf32> to vector<8x128xf32>
    %14 = vector.extract_strided_slice %11 {offsets = [0, 256], sizes = [8, 128], strides = [1, 1]} : vector<8x384xf32> to vector<8x128xf32>
    %c1_i32 = arith.constant 1 : i32
    %15 = tpu.dynamic_rotate %12 by %c1_i32 dim 0 : vector<8x128xf32>, i32 -> vector<8x128xf32>
    %16 = tpu.iota {dimensions = array<i32: 0>} : vector<8x128xi32>
    %c1_i32_10 = arith.constant 1 : i32
    %17 = vector.broadcast %c1_i32_10 : i32 to vector<8x128xi32>
    %18 = arith.cmpi sge, %16, %17 : vector<8x128xi32>
    %cst_11 = arith.constant 0.000000e+00 : f32
    %19 = vector.broadcast %cst_11 : f32 to vector<8x128xf32>
    %20 = arith.select %18, %15, %19 : vector<8x128xi1>, vector<8x128xf32>
    %21 = arith.addf %20, %13 : vector<8x128xf32>
    %c7_i32 = arith.constant 7 : i32
    %22 = tpu.dynamic_rotate %14 by %c7_i32 dim 0 : vector<8x128xf32>, i32 -> vector<8x128xf32>
    %23 = tpu.iota {dimensions = array<i32: 0>} : vector<8x128xi32>
    %c7_i32_12 = arith.constant 7 : i32
    %24 = vector.broadcast %c7_i32_12 : i32 to vector<8x128xi32>
    %25 = arith.cmpi slt, %23, %24 : vector<8x128xi32>
    %cst_13 = arith.constant 0.000000e+00 : f32
    %26 = vector.broadcast %cst_13 : f32 to vector<8x128xf32>
    %27 = arith.select %25, %22, %26 : vector<8x128xi1>, vector<8x128xf32>
    %28 = arith.addf %21, %27 : vector<8x128xf32>
    %c0_14 = arith.constant 0 : index
    %c0_15 = arith.constant 0 : index
    %29 = vector.load %arg5[%c0_14, %c0_15] : memref<1x128xf32, #tpu.memory_space<vmem>>, vector<1x128xf32>
    %30 = vector.broadcast %29 : vector<1x128xf32> to vector<8x128xf32>
    %31 = arith.addf %28, %30 : vector<8x128xf32>
    %cst_16 = arith.constant 0.000000e+00 : f32
    %32 = vector.broadcast %cst_16 : f32 to vector<8x128xf32>
    %33 = arith.maximumf %31, %32 : vector<8x128xf32>
    %c0_17 = arith.constant 0 : index
    %c0_18 = arith.constant 0 : index
    %34 = vector.load %arg6[%c0_17, %c0_18] : memref<128x256xbf16, #tpu.memory_space<vmem>>, vector<128x256xbf16>
    %35 = arith.truncf %33 : vector<8x128xf32> to vector<8x128xbf16>
    %cst_19 = arith.constant dense<0.000000e+00> : vector<8x256xf32>
    %36 = tpu.matmul %35, %34, %cst_19 {dimension_numbers = #tpu.dot_dimension_numbers<[1], [0], [0], [1], [0, 0, 1, 1], [], []>} : vector<8x128xbf16>, vector<128x256xbf16>, vector<8x256xf32> -> vector<8x256xf32>
    %c0_20 = arith.constant 0 : index
    %c0_21 = arith.constant 0 : index
    %37 = vector.load %arg7[%c0_20, %c0_21] : memref<1x256xf32, #tpu.memory_space<vmem>>, vector<1x256xf32>
    %38 = vector.broadcast %37 : vector<1x256xf32> to vector<8x256xf32>
    %39 = arith.addf %36, %38 : vector<8x256xf32>
    %40 = arith.truncf %39 : vector<8x256xf32> to vector<8x256xbf16>
    %c0_22 = arith.constant 0 : index
    %c0_23 = arith.constant 0 : index
    %c0_24 = arith.constant 0 : index
    %41 = vector.load %arg8[%c0_22, %c0_23, %c0_24] : memref<1x8x256xbf16, #tpu.memory_space<vmem>>, vector<1x8x256xbf16>
    %42 = vector.shape_cast %41 : vector<1x8x256xbf16> to vector<8x256xbf16>
    %43 = vector.shape_cast %40 : vector<8x256xbf16> to vector<1x8x256xbf16>
    tpu.vector_store %arg8[%c0_22, %c0_23, %c0_24], %43 {strides = array<i32>} : memref<1x8x256xbf16, #tpu.memory_space<vmem>>, vector<1x8x256xbf16>,
    return
  }
  func.func @transform_0(%arg0: i32) -> (i32, i32, i32) {
    %c0_i32 = arith.constant 0 : i32
    %c0_i32_0 = arith.constant 0 : i32
    %c0_i32_1 = arith.constant 0 : i32
    return %arg0, %c0_i32, %c0_i32_0 : i32, i32, i32
  }
  func.func @transform_1(%arg0: i32) -> (i32, i32) {
    %c0_i32 = arith.constant 0 : i32
    %c0_i32_0 = arith.constant 0 : i32
    %c0_i32_1 = arith.constant 0 : i32
    return %c0_i32, %c0_i32_0 : i32, i32
  }
  func.func @transform_2(%arg0: i32) -> (i32, i32) {
    %c0_i32 = arith.constant 0 : i32
    %c0_i32_0 = arith.constant 0 : i32
    %c0_i32_1 = arith.constant 0 : i32
    return %c0_i32, %c0_i32_0 : i32, i32
  }
  func.func @transform_3(%arg0: i32) -> (i32, i32) {
    %c0_i32 = arith.constant 0 : i32
    %c0_i32_0 = arith.constant 0 : i32
    %c0_i32_1 = arith.constant 0 : i32
    return %c0_i32, %c0_i32_0 : i32, i32
  }
  func.func @transform_4(%arg0: i32) -> (i32, i32) {
    %c0_i32 = arith.constant 0 : i32
    %c0_i32_0 = arith.constant 0 : i32
    %c0_i32_1 = arith.constant 0 : i32
    return %c0_i32, %c0_i32_0 : i32, i32
  }
  func.func @transform_5(%arg0: i32) -> (i32, i32) {
    %c0_i32 = arith.constant 0 : i32
    %c0_i32_0 = arith.constant 0 : i32
    %c0_i32_1 = arith.constant 0 : i32
    return %c0_i32, %c0_i32_0 : i32, i32
  }
  func.func @transform_6(%arg0: i32) -> (i32, i32) {
    %c0_i32 = arith.constant 0 : i32
    %c0_i32_0 = arith.constant 0 : i32
    %c0_i32_1 = arith.constant 0 : i32
    return %c0_i32, %c0_i32_0 : i32, i32
  }
  func.func @transform_7(%arg0: i32) -> (i32, i32, i32) {
    %c0_i32 = arith.constant 0 : i32
    %c0_i32_0 = arith.constant 0 : i32
    %c0_i32_1 = arith.constant 0 : i32
    return %arg0, %c0_i32, %c0_i32_0 : i32, i32, i32
  }
}

module attributes {stable_mosaic.version = 11 : i64} {
  func.func @dec_post_kernel(%arg0: i32, %arg1: memref<1x8x128xbf16, #tpu.memory_space<vmem>>, %arg2: memref<1x8x128xbf16, #tpu.memory_space<vmem>>, %arg3: memref<1x8x1xf32, #tpu.memory_space<vmem>>, %arg4: memref<1x32xf32, #tpu.memory_space<vmem>>, %arg5: memref<1x32xf32, #tpu.memory_space<vmem>>, %arg6: memref<32x128xbf16, #tpu.memory_space<vmem>>, %arg7: memref<1x128xf32, #tpu.memory_space<vmem>>, %arg8: memref<128x128xbf16, #tpu.memory_space<vmem>>, %arg9: memref<128x128xbf16, #tpu.memory_space<vmem>>, %arg10: memref<128x128xbf16, #tpu.memory_space<vmem>>, %arg11: memref<1x128xf32, #tpu.memory_space<vmem>>, %arg12: memref<128x384xbf16, #tpu.memory_space<vmem>>, %arg13: memref<1x128xf32, #tpu.memory_space<vmem>>, %arg14: memref<128x16xbf16, #tpu.memory_space<vmem>>, %arg15: memref<1x16xf32, #tpu.memory_space<vmem>>, %arg16: memref<16x128xbf16, #tpu.memory_space<vmem>>, %arg17: memref<1x128xf32, #tpu.memory_space<vmem>>, %arg18: memref<128x384xbf16, #tpu.memory_space<vmem>>, %arg19: memref<1x128xf32, #tpu.memory_space<vmem>>, %arg20: memref<128x16xbf16, #tpu.memory_space<vmem>>, %arg21: memref<1x16xf32, #tpu.memory_space<vmem>>, %arg22: memref<1x8x16xf32, #tpu.memory_space<vmem>>, %arg23: memref<1x8x16xf32, #tpu.memory_space<vmem>>) attributes {dimension_semantics = [#tpu.dimension_semantics<parallel>], iteration_bounds = array<i64: 2>, scalar_prefetch = 0 : i64, scratch_operands = 0 : i64, tpu.core_type = #tpu.core_type<tc>, window_params = [{transform_indices = @transform_0, window_bounds = array<i64: 1, 8, 128>}, {transform_indices = @transform_1, window_bounds = array<i64: 1, 8, 128>}, {transform_indices = @transform_2, window_bounds = array<i64: 1, 8, 1>}, {pipeline_mode = #tpu.pipeline_mode<synchronous>, transform_indices = @transform_3, window_bounds = array<i64: 1, 32>}, {pipeline_mode = #tpu.pipeline_mode<synchronous>, transform_indices = @transform_4, window_bounds = array<i64: 1, 32>}, {pipeline_mode = #tpu.pipeline_mode<synchronous>, transform_indices = @transform_5, window_bounds = array<i64: 32, 128>}, {pipeline_mode = #tpu.pipeline_mode<synchronous>, transform_indices = @transform_6, window_bounds = array<i64: 1, 128>}, {pipeline_mode = #tpu.pipeline_mode<synchronous>, transform_indices = @transform_7, window_bounds = array<i64: 128, 128>}, {pipeline_mode = #tpu.pipeline_mode<synchronous>, transform_indices = @transform_8, window_bounds = array<i64: 128, 128>}, {pipeline_mode = #tpu.pipeline_mode<synchronous>, transform_indices = @transform_9, window_bounds = array<i64: 128, 128>}, {pipeline_mode = #tpu.pipeline_mode<synchronous>, transform_indices = @transform_10, window_bounds = array<i64: 1, 128>}, {pipeline_mode = #tpu.pipeline_mode<synchronous>, transform_indices = @transform_11, window_bounds = array<i64: 128, 384>}, {pipeline_mode = #tpu.pipeline_mode<synchronous>, transform_indices = @transform_12, window_bounds = array<i64: 1, 128>}, {pipeline_mode = #tpu.pipeline_mode<synchronous>, transform_indices = @transform_13, window_bounds = array<i64: 128, 16>}, {pipeline_mode = #tpu.pipeline_mode<synchronous>, transform_indices = @transform_14, window_bounds = array<i64: 1, 16>}, {pipeline_mode = #tpu.pipeline_mode<synchronous>, transform_indices = @transform_15, window_bounds = array<i64: 16, 128>}, {pipeline_mode = #tpu.pipeline_mode<synchronous>, transform_indices = @transform_16, window_bounds = array<i64: 1, 128>}, {pipeline_mode = #tpu.pipeline_mode<synchronous>, transform_indices = @transform_17, window_bounds = array<i64: 128, 384>}, {pipeline_mode = #tpu.pipeline_mode<synchronous>, transform_indices = @transform_18, window_bounds = array<i64: 1, 128>}, {pipeline_mode = #tpu.pipeline_mode<synchronous>, transform_indices = @transform_19, window_bounds = array<i64: 128, 16>}, {pipeline_mode = #tpu.pipeline_mode<synchronous>, transform_indices = @transform_20, window_bounds = array<i64: 1, 16>}, {transform_indices = @transform_21, window_bounds = array<i64: 1, 8, 16>}, {transform_indices = @transform_22, window_bounds = array<i64: 1, 8, 16>}]} {
    %c0 = arith.constant 0 : index
    %c0_0 = arith.constant 0 : index
    %c0_1 = arith.constant 0 : index
    %0 = vector.load %arg1[%c0, %c0_0, %c0_1] : memref<1x8x128xbf16, #tpu.memory_space<vmem>>, vector<1x8x128xbf16>
    %1 = vector.shape_cast %0 : vector<1x8x128xbf16> to vector<8x128xbf16>
    %c0_2 = arith.constant 0 : index
    %c0_3 = arith.constant 0 : index
    %c0_4 = arith.constant 0 : index
    %2 = vector.load %arg2[%c0_2, %c0_3, %c0_4] : memref<1x8x128xbf16, #tpu.memory_space<vmem>>, vector<1x8x128xbf16>
    %3 = vector.shape_cast %2 : vector<1x8x128xbf16> to vector<8x128xbf16>
    %c0_5 = arith.constant 0 : index
    %c0_6 = arith.constant 0 : index
    %4 = vector.load %arg8[%c0_5, %c0_6] : memref<128x128xbf16, #tpu.memory_space<vmem>>, vector<128x128xbf16>
    %cst = arith.constant dense<0.000000e+00> : vector<8x128xf32>
    %5 = tpu.matmul %1, %4, %cst {dimension_numbers = #tpu.dot_dimension_numbers<[1], [0], [0], [1], [0, 0, 1, 1], [], []>} : vector<8x128xbf16>, vector<128x128xbf16>, vector<8x128xf32> -> vector<8x128xf32>
    %c0_7 = arith.constant 0 : index
    %c0_8 = arith.constant 0 : index
    %6 = vector.load %arg9[%c0_7, %c0_8] : memref<128x128xbf16, #tpu.memory_space<vmem>>, vector<128x128xbf16>
    %cst_9 = arith.constant dense<0.000000e+00> : vector<8x128xf32>
    %7 = tpu.matmul %3, %6, %cst_9 {dimension_numbers = #tpu.dot_dimension_numbers<[1], [0], [0], [1], [0, 0, 1, 1], [], []>} : vector<8x128xbf16>, vector<128x128xbf16>, vector<8x128xf32> -> vector<8x128xf32>
    %8 = arith.addf %5, %7 : vector<8x128xf32>
    %c0_10 = arith.constant 0 : index
    %c0_11 = arith.constant 0 : index
    %9 = vector.load %arg11[%c0_10, %c0_11] : memref<1x128xf32, #tpu.memory_space<vmem>>, vector<1x128xf32>
    %10 = vector.broadcast %9 : vector<1x128xf32> to vector<8x128xf32>
    %11 = arith.addf %8, %10 : vector<8x128xf32>
    %c0_12 = arith.constant 0 : index
    %c0_13 = arith.constant 0 : index
    %c0_14 = arith.constant 0 : index
    %12 = vector.load %arg3[%c0_12, %c0_13, %c0_14] : memref<1x8x1xf32, #tpu.memory_space<vmem>>, vector<1x8x1xf32>
    %13 = vector.shape_cast %12 : vector<1x8x1xf32> to vector<8x1xf32>
    %c0_15 = arith.constant 0 : index
    %c0_16 = arith.constant 0 : index
    %14 = vector.load %arg4[%c0_15, %c0_16] : memref<1x32xf32, #tpu.memory_space<vmem>>, vector<1x32xf32>
    %15 = vector.broadcast %13 : vector<8x1xf32> to vector<8x32xf32>
    %16 = vector.broadcast %14 : vector<1x32xf32> to vector<8x32xf32>
    %17 = arith.mulf %15, %16 : vector<8x32xf32>
    %c0_17 = arith.constant 0 : index
    %c0_18 = arith.constant 0 : index
    %18 = vector.load %arg5[%c0_17, %c0_18] : memref<1x32xf32, #tpu.memory_space<vmem>>, vector<1x32xf32>
    %19 = vector.broadcast %18 : vector<1x32xf32> to vector<8x32xf32>
    %20 = arith.addf %17, %19 : vector<8x32xf32>
    %cst_19 = arith.constant 0.000000e+00 : f32
    %21 = vector.broadcast %cst_19 : f32 to vector<8x32xf32>
    %22 = arith.maximumf %20, %21 : vector<8x32xf32>
    %c0_20 = arith.constant 0 : index
    %c0_21 = arith.constant 0 : index
    %23 = vector.load %arg6[%c0_20, %c0_21] : memref<32x128xbf16, #tpu.memory_space<vmem>>, vector<32x128xbf16>
    %24 = arith.truncf %22 : vector<8x32xf32> to vector<8x32xbf16>
    %cst_22 = arith.constant dense<0.000000e+00> : vector<8x128xf32>
    %25 = tpu.matmul %24, %23, %cst_22 {dimension_numbers = #tpu.dot_dimension_numbers<[1], [0], [0], [1], [0, 0, 1, 1], [], []>} : vector<8x32xbf16>, vector<32x128xbf16>, vector<8x128xf32> -> vector<8x128xf32>
    %c0_23 = arith.constant 0 : index
    %c0_24 = arith.constant 0 : index
    %26 = vector.load %arg7[%c0_23, %c0_24] : memref<1x128xf32, #tpu.memory_space<vmem>>, vector<1x128xf32>
    %27 = vector.broadcast %26 : vector<1x128xf32> to vector<8x128xf32>
    %28 = arith.addf %25, %27 : vector<8x128xf32>
    %29 = math.tanh %28 : vector<8x128xf32>
    %c0_25 = arith.constant 0 : index
    %c0_26 = arith.constant 0 : index
    %30 = vector.load %arg10[%c0_25, %c0_26] : memref<128x128xbf16, #tpu.memory_space<vmem>>, vector<128x128xbf16>
    %31 = arith.truncf %29 : vector<8x128xf32> to vector<8x128xbf16>
    %cst_27 = arith.constant dense<0.000000e+00> : vector<8x128xf32>
    %32 = tpu.matmul %31, %30, %cst_27 {dimension_numbers = #tpu.dot_dimension_numbers<[1], [0], [0], [1], [0, 0, 1, 1], [], []>} : vector<8x128xbf16>, vector<128x128xbf16>, vector<8x128xf32> -> vector<8x128xf32>
    %33 = arith.addf %11, %32 : vector<8x128xf32>
    %cst_28 = arith.constant 0.000000e+00 : f32
    %34 = vector.broadcast %cst_28 : f32 to vector<8x128xf32>
    %35 = arith.maximumf %33, %34 : vector<8x128xf32>
    %c0_29 = arith.constant 0 : index
    %c0_30 = arith.constant 0 : index
    %36 = vector.load %arg12[%c0_29, %c0_30] : memref<128x384xbf16, #tpu.memory_space<vmem>>, vector<128x384xbf16>
    %37 = arith.truncf %35 : vector<8x128xf32> to vector<8x128xbf16>
    %cst_31 = arith.constant dense<0.000000e+00> : vector<8x384xf32>
    %38 = tpu.matmul %37, %36, %cst_31 {dimension_numbers = #tpu.dot_dimension_numbers<[1], [0], [0], [1], [0, 0, 1, 1], [], []>} : vector<8x128xbf16>, vector<128x384xbf16>, vector<8x384xf32> -> vector<8x384xf32>
    %39 = vector.extract_strided_slice %38 {offsets = [0, 0], sizes = [8, 128], strides = [1, 1]} : vector<8x384xf32> to vector<8x128xf32>
    %40 = vector.extract_strided_slice %38 {offsets = [0, 128], sizes = [8, 128], strides = [1, 1]} : vector<8x384xf32> to vector<8x128xf32>
    %41 = vector.extract_strided_slice %38 {offsets = [0, 256], sizes = [8, 128], strides = [1, 1]} : vector<8x384xf32> to vector<8x128xf32>
    %c2_i32 = arith.constant 2 : i32
    %42 = tpu.dynamic_rotate %39 by %c2_i32 dim 0 : vector<8x128xf32>, i32 -> vector<8x128xf32>
    %43 = tpu.iota {dimensions = array<i32: 0>} : vector<8x128xi32>
    %c2_i32_32 = arith.constant 2 : i32
    %44 = vector.broadcast %c2_i32_32 : i32 to vector<8x128xi32>
    %45 = arith.cmpi sge, %43, %44 : vector<8x128xi32>
    %cst_33 = arith.constant 0.000000e+00 : f32
    %46 = vector.broadcast %cst_33 : f32 to vector<8x128xf32>
    %47 = arith.select %45, %42, %46 : vector<8x128xi1>, vector<8x128xf32>
    %c1_i32 = arith.constant 1 : i32
    %48 = tpu.dynamic_rotate %40 by %c1_i32 dim 0 : vector<8x128xf32>, i32 -> vector<8x128xf32>
    %49 = tpu.iota {dimensions = array<i32: 0>} : vector<8x128xi32>
    %c1_i32_34 = arith.constant 1 : i32
    %50 = vector.broadcast %c1_i32_34 : i32 to vector<8x128xi32>
    %51 = arith.cmpi sge, %49, %50 : vector<8x128xi32>
    %cst_35 = arith.constant 0.000000e+00 : f32
    %52 = vector.broadcast %cst_35 : f32 to vector<8x128xf32>
    %53 = arith.select %51, %48, %52 : vector<8x128xi1>, vector<8x128xf32>
    %54 = arith.addf %47, %53 : vector<8x128xf32>
    %55 = arith.addf %54, %41 : vector<8x128xf32>
    %c0_36 = arith.constant 0 : index
    %c0_37 = arith.constant 0 : index
    %56 = vector.load %arg13[%c0_36, %c0_37] : memref<1x128xf32, #tpu.memory_space<vmem>>, vector<1x128xf32>
    %57 = vector.broadcast %56 : vector<1x128xf32> to vector<8x128xf32>
    %58 = arith.addf %55, %57 : vector<8x128xf32>
    %cst_38 = arith.constant 0.000000e+00 : f32
    %59 = vector.broadcast %cst_38 : f32 to vector<8x128xf32>
    %60 = arith.maximumf %58, %59 : vector<8x128xf32>
    %c0_39 = arith.constant 0 : index
    %c0_40 = arith.constant 0 : index
    %61 = vector.load %arg14[%c0_39, %c0_40] : memref<128x16xbf16, #tpu.memory_space<vmem>>, vector<128x16xbf16>
    %62 = arith.truncf %60 : vector<8x128xf32> to vector<8x128xbf16>
    %cst_41 = arith.constant dense<0.000000e+00> : vector<8x16xf32>
    %63 = tpu.matmul %62, %61, %cst_41 {dimension_numbers = #tpu.dot_dimension_numbers<[1], [0], [0], [1], [0, 0, 1, 1], [], []>} : vector<8x128xbf16>, vector<128x16xbf16>, vector<8x16xf32> -> vector<8x16xf32>
    %c0_42 = arith.constant 0 : index
    %c0_43 = arith.constant 0 : index
    %64 = vector.load %arg15[%c0_42, %c0_43] : memref<1x16xf32, #tpu.memory_space<vmem>>, vector<1x16xf32>
    %65 = vector.broadcast %64 : vector<1x16xf32> to vector<8x16xf32>
    %66 = arith.addf %63, %65 : vector<8x16xf32>
    %67 = arith.negf %66 : vector<8x16xf32>
    %68 = math.exp %67 : vector<8x16xf32>
    %cst_44 = arith.constant 1.000000e+00 : f32
    %69 = vector.broadcast %cst_44 : f32 to vector<8x16xf32>
    %70 = arith.addf %69, %68 : vector<8x16xf32>
    %71 = arith.divf %69, %70 : vector<8x16xf32>
    %c0_45 = arith.constant 0 : index
    %c0_46 = arith.constant 0 : index
    %c0_47 = arith.constant 0 : index
    %72 = vector.load %arg22[%c0_45, %c0_46, %c0_47] : memref<1x8x16xf32, #tpu.memory_space<vmem>>, vector<1x8x16xf32>
    %73 = vector.shape_cast %72 : vector<1x8x16xf32> to vector<8x16xf32>
    %74 = vector.shape_cast %71 : vector<8x16xf32> to vector<1x8x16xf32>
    tpu.vector_store %arg22[%c0_45, %c0_46, %c0_47], %74 {strides = array<i32>} : memref<1x8x16xf32, #tpu.memory_space<vmem>>, vector<1x8x16xf32>,
    %c0_48 = arith.constant 0 : index
    %c0_49 = arith.constant 0 : index
    %75 = vector.load %arg16[%c0_48, %c0_49] : memref<16x128xbf16, #tpu.memory_space<vmem>>, vector<16x128xbf16>
    %76 = arith.truncf %71 : vector<8x16xf32> to vector<8x16xbf16>
    %cst_50 = arith.constant dense<0.000000e+00> : vector<8x128xf32>
    %77 = tpu.matmul %76, %75, %cst_50 {dimension_numbers = #tpu.dot_dimension_numbers<[1], [0], [0], [1], [0, 0, 1, 1], [], []>} : vector<8x16xbf16>, vector<16x128xbf16>, vector<8x128xf32> -> vector<8x128xf32>
    %c0_51 = arith.constant 0 : index
    %c0_52 = arith.constant 0 : index
    %78 = vector.load %arg17[%c0_51, %c0_52] : memref<1x128xf32, #tpu.memory_space<vmem>>, vector<1x128xf32>
    %79 = vector.broadcast %78 : vector<1x128xf32> to vector<8x128xf32>
    %80 = arith.addf %77, %79 : vector<8x128xf32>
    %cst_53 = arith.constant 0.000000e+00 : f32
    %81 = vector.broadcast %cst_53 : f32 to vector<8x128xf32>
    %82 = arith.maximumf %80, %81 : vector<8x128xf32>
    %c0_54 = arith.constant 0 : index
    %c0_55 = arith.constant 0 : index
    %83 = vector.load %arg18[%c0_54, %c0_55] : memref<128x384xbf16, #tpu.memory_space<vmem>>, vector<128x384xbf16>
    %84 = arith.truncf %82 : vector<8x128xf32> to vector<8x128xbf16>
    %cst_56 = arith.constant dense<0.000000e+00> : vector<8x384xf32>
    %85 = tpu.matmul %84, %83, %cst_56 {dimension_numbers = #tpu.dot_dimension_numbers<[1], [0], [0], [1], [0, 0, 1, 1], [], []>} : vector<8x128xbf16>, vector<128x384xbf16>, vector<8x384xf32> -> vector<8x384xf32>
    %86 = vector.extract_strided_slice %85 {offsets = [0, 0], sizes = [8, 128], strides = [1, 1]} : vector<8x384xf32> to vector<8x128xf32>
    %87 = vector.extract_strided_slice %85 {offsets = [0, 128], sizes = [8, 128], strides = [1, 1]} : vector<8x384xf32> to vector<8x128xf32>
    %88 = vector.extract_strided_slice %85 {offsets = [0, 256], sizes = [8, 128], strides = [1, 1]} : vector<8x384xf32> to vector<8x128xf32>
    %c1_i32_57 = arith.constant 1 : i32
    %89 = tpu.dynamic_rotate %86 by %c1_i32_57 dim 0 : vector<8x128xf32>, i32 -> vector<8x128xf32>
    %90 = tpu.iota {dimensions = array<i32: 0>} : vector<8x128xi32>
    %c1_i32_58 = arith.constant 1 : i32
    %91 = vector.broadcast %c1_i32_58 : i32 to vector<8x128xi32>
    %92 = arith.cmpi sge, %90, %91 : vector<8x128xi32>
    %cst_59 = arith.constant 0.000000e+00 : f32
    %93 = vector.broadcast %cst_59 : f32 to vector<8x128xf32>
    %94 = arith.select %92, %89, %93 : vector<8x128xi1>, vector<8x128xf32>
    %95 = arith.addf %94, %87 : vector<8x128xf32>
    %c7_i32 = arith.constant 7 : i32
    %96 = tpu.dynamic_rotate %88 by %c7_i32 dim 0 : vector<8x128xf32>, i32 -> vector<8x128xf32>
    %97 = tpu.iota {dimensions = array<i32: 0>} : vector<8x128xi32>
    %c7_i32_60 = arith.constant 7 : i32
    %98 = vector.broadcast %c7_i32_60 : i32 to vector<8x128xi32>
    %99 = arith.cmpi slt, %97, %98 : vector<8x128xi32>
    %cst_61 = arith.constant 0.000000e+00 : f32
    %100 = vector.broadcast %cst_61 : f32 to vector<8x128xf32>
    %101 = arith.select %99, %96, %100 : vector<8x128xi1>, vector<8x128xf32>
    %102 = arith.addf %95, %101 : vector<8x128xf32>
    %c0_62 = arith.constant 0 : index
    %c0_63 = arith.constant 0 : index
    %103 = vector.load %arg19[%c0_62, %c0_63] : memref<1x128xf32, #tpu.memory_space<vmem>>, vector<1x128xf32>
    %104 = vector.broadcast %103 : vector<1x128xf32> to vector<8x128xf32>
    %105 = arith.addf %102, %104 : vector<8x128xf32>
    %cst_64 = arith.constant 0.000000e+00 : f32
    %106 = vector.broadcast %cst_64 : f32 to vector<8x128xf32>
    %107 = arith.maximumf %105, %106 : vector<8x128xf32>
    %c0_65 = arith.constant 0 : index
    %c0_66 = arith.constant 0 : index
    %108 = vector.load %arg20[%c0_65, %c0_66] : memref<128x16xbf16, #tpu.memory_space<vmem>>, vector<128x16xbf16>
    %109 = arith.truncf %107 : vector<8x128xf32> to vector<8x128xbf16>
    %cst_67 = arith.constant dense<0.000000e+00> : vector<8x16xf32>
    %110 = tpu.matmul %109, %108, %cst_67 {dimension_numbers = #tpu.dot_dimension_numbers<[1], [0], [0], [1], [0, 0, 1, 1], [], []>} : vector<8x128xbf16>, vector<128x16xbf16>, vector<8x16xf32> -> vector<8x16xf32>
    %c0_68 = arith.constant 0 : index
    %c0_69 = arith.constant 0 : index
    %111 = vector.load %arg21[%c0_68, %c0_69] : memref<1x16xf32, #tpu.memory_space<vmem>>, vector<1x16xf32>
    %112 = vector.broadcast %111 : vector<1x16xf32> to vector<8x16xf32>
    %113 = arith.addf %110, %112 : vector<8x16xf32>
    %114 = arith.negf %113 : vector<8x16xf32>
    %115 = math.exp %114 : vector<8x16xf32>
    %cst_70 = arith.constant 1.000000e+00 : f32
    %116 = vector.broadcast %cst_70 : f32 to vector<8x16xf32>
    %117 = arith.addf %116, %115 : vector<8x16xf32>
    %118 = arith.divf %116, %117 : vector<8x16xf32>
    %c0_71 = arith.constant 0 : index
    %c0_72 = arith.constant 0 : index
    %c0_73 = arith.constant 0 : index
    %119 = vector.load %arg23[%c0_71, %c0_72, %c0_73] : memref<1x8x16xf32, #tpu.memory_space<vmem>>, vector<1x8x16xf32>
    %120 = vector.shape_cast %119 : vector<1x8x16xf32> to vector<8x16xf32>
    %121 = vector.shape_cast %118 : vector<8x16xf32> to vector<1x8x16xf32>
    tpu.vector_store %arg23[%c0_71, %c0_72, %c0_73], %121 {strides = array<i32>} : memref<1x8x16xf32, #tpu.memory_space<vmem>>, vector<1x8x16xf32>,
    return
  }
  func.func @transform_0(%arg0: i32) -> (i32, i32, i32) {
    %c0_i32 = arith.constant 0 : i32
    %c0_i32_0 = arith.constant 0 : i32
    %c0_i32_1 = arith.constant 0 : i32
    return %arg0, %c0_i32, %c0_i32_0 : i32, i32, i32
  }
  func.func @transform_1(%arg0: i32) -> (i32, i32, i32) {
    %c0_i32 = arith.constant 0 : i32
    %c0_i32_0 = arith.constant 0 : i32
    %c0_i32_1 = arith.constant 0 : i32
    return %arg0, %c0_i32, %c0_i32_0 : i32, i32, i32
  }
  func.func @transform_2(%arg0: i32) -> (i32, i32, i32) {
    %c0_i32 = arith.constant 0 : i32
    %c0_i32_0 = arith.constant 0 : i32
    %c0_i32_1 = arith.constant 0 : i32
    return %arg0, %c0_i32, %c0_i32_0 : i32, i32, i32
  }
  func.func @transform_3(%arg0: i32) -> (i32, i32) {
    %c0_i32 = arith.constant 0 : i32
    %c0_i32_0 = arith.constant 0 : i32
    %c0_i32_1 = arith.constant 0 : i32
    return %c0_i32, %c0_i32_0 : i32, i32
  }
  func.func @transform_4(%arg0: i32) -> (i32, i32) {
    %c0_i32 = arith.constant 0 : i32
    %c0_i32_0 = arith.constant 0 : i32
    %c0_i32_1 = arith.constant 0 : i32
    return %c0_i32, %c0_i32_0 : i32, i32
  }
  func.func @transform_5(%arg0: i32) -> (i32, i32) {
    %c0_i32 = arith.constant 0 : i32
    %c0_i32_0 = arith.constant 0 : i32
    %c0_i32_1 = arith.constant 0 : i32
    return %c0_i32, %c0_i32_0 : i32, i32
  }
  func.func @transform_6(%arg0: i32) -> (i32, i32) {
    %c0_i32 = arith.constant 0 : i32
    %c0_i32_0 = arith.constant 0 : i32
    %c0_i32_1 = arith.constant 0 : i32
    return %c0_i32, %c0_i32_0 : i32, i32
  }
  func.func @transform_7(%arg0: i32) -> (i32, i32) {
    %c0_i32 = arith.constant 0 : i32
    %c0_i32_0 = arith.constant 0 : i32
    %c0_i32_1 = arith.constant 0 : i32
    return %c0_i32, %c0_i32_0 : i32, i32
  }
  func.func @transform_8(%arg0: i32) -> (i32, i32) {
    %c0_i32 = arith.constant 0 : i32
    %c0_i32_0 = arith.constant 0 : i32
    %c0_i32_1 = arith.constant 0 : i32
    return %c0_i32, %c0_i32_0 : i32, i32
  }
  func.func @transform_9(%arg0: i32) -> (i32, i32) {
    %c0_i32 = arith.constant 0 : i32
    %c0_i32_0 = arith.constant 0 : i32
    %c0_i32_1 = arith.constant 0 : i32
    return %c0_i32, %c0_i32_0 : i32, i32
  }
  func.func @transform_10(%arg0: i32) -> (i32, i32) {
    %c0_i32 = arith.constant 0 : i32
    %c0_i32_0 = arith.constant 0 : i32
    %c0_i32_1 = arith.constant 0 : i32
    return %c0_i32, %c0_i32_0 : i32, i32
  }
  func.func @transform_11(%arg0: i32) -> (i32, i32) {
    %c0_i32 = arith.constant 0 : i32
    %c0_i32_0 = arith.constant 0 : i32
    %c0_i32_1 = arith.constant 0 : i32
    return %c0_i32, %c0_i32_0 : i32, i32
  }
  func.func @transform_12(%arg0: i32) -> (i32, i32) {
    %c0_i32 = arith.constant 0 : i32
    %c0_i32_0 = arith.constant 0 : i32
    %c0_i32_1 = arith.constant 0 : i32
    return %c0_i32, %c0_i32_0 : i32, i32
  }
  func.func @transform_13(%arg0: i32) -> (i32, i32) {
    %c0_i32 = arith.constant 0 : i32
    %c0_i32_0 = arith.constant 0 : i32
    %c0_i32_1 = arith.constant 0 : i32
    return %c0_i32, %c0_i32_0 : i32, i32
  }
  func.func @transform_14(%arg0: i32) -> (i32, i32) {
    %c0_i32 = arith.constant 0 : i32
    %c0_i32_0 = arith.constant 0 : i32
    %c0_i32_1 = arith.constant 0 : i32
    return %c0_i32, %c0_i32_0 : i32, i32
  }
  func.func @transform_15(%arg0: i32) -> (i32, i32) {
    %c0_i32 = arith.constant 0 : i32
    %c0_i32_0 = arith.constant 0 : i32
    %c0_i32_1 = arith.constant 0 : i32
    return %c0_i32, %c0_i32_0 : i32, i32
  }
  func.func @transform_16(%arg0: i32) -> (i32, i32) {
    %c0_i32 = arith.constant 0 : i32
    %c0_i32_0 = arith.constant 0 : i32
    %c0_i32_1 = arith.constant 0 : i32
    return %c0_i32, %c0_i32_0 : i32, i32
  }
  func.func @transform_17(%arg0: i32) -> (i32, i32) {
    %c0_i32 = arith.constant 0 : i32
    %c0_i32_0 = arith.constant 0 : i32
    %c0_i32_1 = arith.constant 0 : i32
    return %c0_i32, %c0_i32_0 : i32, i32
  }
  func.func @transform_18(%arg0: i32) -> (i32, i32) {
    %c0_i32 = arith.constant 0 : i32
    %c0_i32_0 = arith.constant 0 : i32
    %c0_i32_1 = arith.constant 0 : i32
    return %c0_i32, %c0_i32_0 : i32, i32
  }
  func.func @transform_19(%arg0: i32) -> (i32, i32) {
    %c0_i32 = arith.constant 0 : i32
    %c0_i32_0 = arith.constant 0 : i32
    %c0_i32_1 = arith.constant 0 : i32
    return %c0_i32, %c0_i32_0 : i32, i32
  }
  func.func @transform_20(%arg0: i32) -> (i32, i32) {
    %c0_i32 = arith.constant 0 : i32
    %c0_i32_0 = arith.constant 0 : i32
    %c0_i32_1 = arith.constant 0 : i32
    return %c0_i32, %c0_i32_0 : i32, i32
  }
  func.func @transform_21(%arg0: i32) -> (i32, i32, i32) {
    %c0_i32 = arith.constant 0 : i32
    %c0_i32_0 = arith.constant 0 : i32
    %c0_i32_1 = arith.constant 0 : i32
    return %arg0, %c0_i32, %c0_i32_0 : i32, i32, i32
  }
  func.func @transform_22(%arg0: i32) -> (i32, i32, i32) {
    %c0_i32 = arith.constant 0 : i32
    %c0_i32_0 = arith.constant 0 : i32
    %c0_i32_1 = arith.constant 0 : i32
    return %arg0, %c0_i32, %c0_i32_0 : i32, i32, i32
  }
}

</mosaic_0001>

<bundles_post_ra>
// kernel: dctts_forward.6
= control target key start
LH: loop header
LB: loop body
LE: loop exit
PB: predicated region body
PF: predicated region fallthrough
CT: control target
= control target key end

     0   :  { %s582_s12 = smov 0   ;;  %s584_s13 = smov 0   ;;  %s629_s0 = inlined_call_operand.vmem [shape: bf16[2,8,128], index: 0, kind: input, shape index: {}]   ;;  %s630_s1 = inlined_call_operand.vmem [shape: bf16[2,8,256], index: 1, kind: input, shape index: {}]   ;;  %s631_s2 = inlined_call_operand.vmem [shape: bf16[2,8,128], index: 2, kind: output, shape index: {0}]   ;;  %s632_s3 = inlined_call_operand.vmem [shape: bf16[2,8,8], index: 3, kind: output, shape index: {1}]  }
   0x1   :  { %s586_s14 = smov 0  }
   0x2 LB: > { %s26_s15 = sadd.s32 1, %s554_s13  ;;  %p478_p0 = scmp.ge.s32.totalorder %s558_s14, 1  ;;  %s558_s14 = sphi %s586_s14, %s14_s14   ;;  %s554_s13 = sphi %s584_s13, %s634_s13   ;;  %s550_s12 = sphi %s582_s12, %s633_s12  }
   0x3   : > { %p28_p1 = scmp.ge.s32.totalorder %s26_s15, 2  ;;  %p170_p2 = scmp.lt.s32.totalorder %s558_s14, 3 }
   0x5   : > { %s636_s15 = smov (%p28_p1, %s26_s15), 0  ;;  %p171_p3 = pnand %p478_p0, %p170_p2 }
   0x6   : > { %p210_p4 = scmp.lt.s32.totalorder (!%p171_p3), %s550_s12, 1  ;;  %v560_v0 = vmov (!%p171_p3), 0.0   ;;  %vm561_vm0 = vmmov (!%p171_p3), 0   ;;  %vm280_vm1 = vcmask (!%p171_p3), 64512   ;;  %vm301_vm2 = vcmask (!%p171_p3), 1043456  }
   0x7   : > { %174 = sbr.rel (%p171_p3) target bundleno = 770 (0x302), region = 28  ;;  %493 = vmatprep.subr.bf16.mxu0 (!%p171_p3), %v560_v0  ;;  %495 = vmatprep.mubr.msk.bf16.mxu0 (!%p171_p3), %vm561_vm0, %v560_v0  ;;  %vm293_vm3 = vcmask (!%p171_p3), 60416  }
   0x8   : > { %499 = vmatprep.subr.bf16.mxu1 (!%p171_p3), %v560_v0  ;;  %501 = vmatprep.mubr.msk.bf16.mxu1 (!%p171_p3), %vm561_vm0, %v560_v0 }
   0xe   : > { %s638_s12 = smov (!%p210_p4, %s550_s12), 1 }
   0xf   : > { %s488_s16 = sshll.u32 %s638_s12, 3  ;;  %s603_s20 = sshll.u32 %s638_s12, 2 }
  0x10   : > { %s221_s19 = scalar_lea.vmem %s630_s1, %s488_s16  ;;  %s216_s23 = scalar_lea.vmem %s629_s0, %s603_s20 }
  0x11   : > { %v238_v1 = vld [vmem:[%s221_s19] sm:$0xff]  ;;  %s235_s26 = scalar_lea.vmem %s632_s3, %s603_s20  ;;  %s228_s29 = scalar_lea.vmem %s631_s2, %s603_s20 }
  0x12   : > { %494 = vmatpush3.bf16.xpose.msra.mxu0 %v238_v1  ;;  %v237_v2 = vld [vmem:[%s216_s23] sm:$0xf]  ;;  %v484_v14 = vcombine.high %v238_v1, %v238_v1 }
  0x14   : > { %v303_v15 = vsel %vm301_vm2, %v484_v14, 0 }
  0x15   : > { %500 = vmatpush3.bf16.msra.mxu1 %v303_v15 }
  0x19   : > { %496 = vmatmul.mubr.bf16.vlgmr.msra.gmra.mrb[0].mxu0 %v237_v2 }
  0xec   : > { %v273_v3 = vpop.f32.mrb[0].mxu0 }
  0xed   : > { %v279_v4 = vmul.f32 0.17677669, %v273_v3  ;;  %v497_v5 = vpop.f32.mrb[1].mxu0 }
  0xee   : > { %v276_v6 = vpop.f32.mrb[2].mxu0 }
  0xef   : > { %v498_v7 = vpop.f32.mrb[3].mxu0  ;;  %v281_v8 = vsel %vm280_vm1, %v279_v4, -inf }
  0xf0   : > { %282 = vmax.xlane.f32.xlu0 %v281_v8 }
 0x17d   : > { %v283_v9 = vpop.xlane.xlu0 %282 }
 0x17e   : > { %v284_v10 = vsub.f32 %v279_v4, %v283_v9 }
 0x180   : > { %v285_v11 = vmul.f32 1.442695, %v284_v10 }
 0x182   : > { %532 = vpow2.f32 %v285_v11 }
 0x18c   : > { %v533_v12 = vpop.eup %532 }
 0x18d   : > { %v287_v13 = vsel %vm280_vm1, %v533_v12, 0.0 }
 0x18e   : > { %288 = vadd.xlane.f32.xlu0 %v287_v13 }
 0x21b   : > { %v289_v16 = vpop.xlane.xlu0 %288 }
 0x21c   : > { %534 = vrcp.f32 %v289_v16 }
 0x226   : > { %v535_v17 = vpop.eup %534 }
 0x227   : > { %v291_v18 = vmul.f32 %v535_v17, %v533_v12 }
 0x229   : > { %v292_v19 = vpack.c.bf16 %v291_v18, %v291_v18 }
 0x22b   : > { %294 = vst.msk [vmem:[%s235_s26] sm:$0xf] %vm293_vm3, %v292_v19  ;;  %502 = vmatmul.mubr.msk.bf16.vlgmr.msra.gmra.mrb[0].mxu1 %vm280_vm1, %v292_v19 }
 0x2fe   : > { %v339_v20 = vpop.f32.mrb[0].mxu1 }
 0x2ff   : > { %v345_v21 = vpack.c.bf16 %v339_v20, %v339_v20  ;;  %v503_v22 = vpop.f32.mrb[1].mxu1 }
 0x300   : > { %v342_v23 = vpop.f32.mrb[2].mxu1 }
 0x301   : > { %346 = vst [vmem:[%s228_s29] sm:$0xf] %v345_v21  ;;  %v504_v24 = vpop.f32.mrb[3].mxu1 }
 0x302 PF: > { %s14_s14 = sadd.s32 1, %s558_s14   ;;  %s633_s12 = smov %s554_s13 }
 0x303   : > { %p11_p5 = scmp.ge.s32.totalorder %s14_s14, 4   ;;  %s634_s13 = smov %s636_s15 }
 0x305   :  { %13 = sbr.rel (!%p11_p5) target bundleno = 2 (0x2), region = 73 }

// kernel: dctts_forward.5
= control target key start
LH: loop header
LB: loop body
LE: loop exit
PB: predicated region body
PF: predicated region fallthrough
CT: control target
= control target key end

     0   :  { %12 = vsyncpa [#allocation3], 0  ;;  %s1057_s24 = smov 0   ;;  %s1176_s0 = inlined_call_operand.vmem [shape: f32[2,8,16], index: 0, kind: input, shape index: {}]   ;;  %s1177_s1 = inlined_call_operand.vmem [shape: bf16[16,128], index: 1, kind: input, shape index: {}]   ;;  %s1178_s2 = inlined_call_operand.vmem [shape: f32[1,128], index: 2, kind: input, shape index: {}]   ;;  %s1179_s3 = inlined_call_operand.hbm [shape: bf16[128,384], index: 3, kind: input, shape index: {}]   ;;  %s1180_s4 = inlined_call_operand.vmem [shape: f32[1,128], index: 4, kind: input, shape index: {}]   ;;  %s1181_s5 = inlined_call_operand.vmem [shape: bf16[128,128], index: 5, kind: input, shape index: {}]   ;;  %s1182_s6 = inlined_call_operand.vmem [shape: f32[1,128], index: 6, kind: input, shape index: {}]   ;;  %s1183_s7 = inlined_call_operand.vmem [shape: bf16[2,8,128], index: 7, kind: output, shape index: {}]  }
   0x1 LB: > { %s1063_s25 = sadd.s32 4294967295, %s1009_s24   ;;  %p794_p0 = scmp.ge.s32.totalorder %s1009_s24, 1  ;;  %s1009_s24 = sphi %s1057_s24, %s18_s24  }
   0x2   : > { %p201_p1 = scmp.lt.s32.totalorder %s1009_s24, 3  ;;  %s1011_s26 = smov [#allocation2]  }
   0x3   : > { %s219_s27 = sshll.u32 %s1011_s26, 4  ;;  %p1184_p3 = scmp.eq.s32.totalorder %s1063_s25, 0  ;;  %s220_s27 = int_to_ptr.vmem [resolvable:$true] %s219_s27 }
   0x4   : > { %p1067_p2 = pnand %p794_p0, %p201_p1  ;;  %s971_s9 = scalar_lea.hbm %s1179_s3, 3072 }
   0x5   : > { %p972_p6 = scmp.ne.s32.totalorder %s1179_s3, %s971_s9  ;;  %p978_p10 = scmp.lt.u32.totalorder %s971_s9, %s1179_s3 }
   0x6   : > { %s1186_s28 = scalar_select %p1067_p2, 1, 0 }
   0x7   : > { %p910_p4 = pneg %p1067_p2 }
   0x9   : > { %p1076_p5 = pnand %p1184_p3, %p910_p4 }
   0xb   : > { %p973_p7 = pneg %p1076_p5 }
   0xd   : > { %p974_p8 = pnand %p973_p7, %p972_p6 }
   0xf   : > { %p975_p9 = pneg %p974_p8 }
  0x11   : > { %p980_p11 = pnand %p978_p10, %p975_p9 }
  0x13   : > { %983 = shalt.err (!%p980_p11)
}
  0x14   : > { %s984_s14 = scalar_lea.vmem %s220_s27, 3072  ;;  %p992_p1 = scmp.lt.s32.totalorder %s220_s27, %s220_s27 }
  0x15   : > { %p985_p12 = scmp.ne.s32.totalorder %s220_s27, %s984_s14  ;;  %p993_p4 = scmp.lt.s32.totalorder %s984_s14, %s984_s14 }
  0x17   : > { %p987_p13 = pnand %p985_p12, %p973_p7  ;;  %p994_p3 = por %p993_p4, %p992_p1 }
  0x19   : > { %p988_p0 = pneg %p987_p13 }
  0x1b   : > { %p995_p2 = pnand %p994_p3, %p988_p0 }
  0x1d   : > { %998 = shalt.err (!%p995_p2)
}
  0x1e   : > { %s1012_s15 = smov 192   ;;  %s1013_s16 = smov 12  }
  0x1f   : > { %913 = dma.hbm_to_vmem [thread:$0]  (!%p1076_p5), %s1179_s3, 3072, %s220_s27, [#allocation3], %s1012_s15, %s1012_s15, %s1013_s16  }
  0x20   : > { %p1188_p6 = scmp.ne.s32.totalorder %s1186_s28, 0 }
  0x21   : > { %p1189_p8 = scmp.eq.s32.totalorder (!%p1188_p6), %s1063_s25, 0 }
  0x22   : > { %251 = sbr.rel (%p1188_p6) target bundleno = 711 (0x2c7), region = 48 }
  0x29   : > { %1004 = dma.done.wait (%p1189_p8), [#allocation3], 3072   ;;  %p1190_p7 = pmov %p1189_p8 }
  0x2a   : > { %p281_p2 = scmp.lt.s32.totalorder %s1063_s25, 1  ;;  %v1014_v0 = vmov 0.0   ;;  %vm1015_vm0 = vmmov 0   ;;  %v930_v1 = vld [vmem:[%s1177_s1] sm:$0xff]   ;;  %vm307_vm1 = vcmask 130048   ;;  %v1016_v28 = vmov 0  }
  0x2b   : > { %1006 = vsyncadd (%p1190_p7), [#allocation3], 4294964224  ;;  %860 = vmatprep.subr.bf16.mxu0 %v1014_v0  ;;  %862 = vmatprep.mubr.msk.bf16.mxu0 %vm1015_vm0, %v1014_v0  ;;  %v931_v4 = vld [vmem:[#allocation2 + $0x4] ss:$12 sps:$4 sm:$0xff]   ;;  %v933_v5 = vld [vmem:[#allocation2] ss:$12 sps:$4 sm:$0xff]   ;;  %v595_v45 = vlaneseq }
  0x2c   : > { %s1192_s25 = smov (!%p281_p2, %s1063_s25), 1  ;;  %861 = vmatpush3.bf16.msra.mxu0 %v930_v1  ;;  %v934_v6 = vld [vmem:[#allocation2 + $0x8] ss:$12 sps:$4 sm:$0xff]   ;;  %513 = vmatprep.subr.bf16.mxu1 %v931_v4  ;;  %v937_v8 = vld [vmem:[#allocation2 + $0x18] ss:$12 sps:$4 sm:$0xff]  }
  0x2d   : > { %s799_s19 = sshll.u32 %s1192_s25, 3  ;;  %866 = vmatprep.subr.bf16.mxu0 %v1014_v0  ;;  %v935_v7 = vld [vmem:[#allocation2 + $0x1c] ss:$12 sps:$4 sm:$0xff]   ;;  %514 = vmatpush1.bf16.msra.mxu1 %v933_v5  ;;  %v938_v9 = vld [vmem:[#allocation2 + $0x20] ss:$12 sps:$4 sm:$0xff]   ;;  %v965_v39 = vld [vmem:[%s1181_s5 + $0x10] sm:$0xff]  }
  0x2e   : > { %s284_s22 = scalar_lea.vmem %s1176_s0, %s799_s19  ;;  %515 = vmatprep.subr.bf16.mxu1 %v935_v7  ;;  %v939_v10 = vld [vmem:[#allocation2 + $0x34] ss:$12 sps:$4 sm:$0xff]   ;;  %v941_v11 = vld [vmem:[#allocation2 + $0x30] ss:$12 sps:$4 sm:$0xff]   ;;  %v942_v12 = vld [vmem:[#allocation2 + $0x38] ss:$12 sps:$4 sm:$0xff]   ;;  %545 = vmatprep.mubr.bf16.mxu1 %v1016_v28 }
  0x2f   : > { %v290_v2 = vld [vmem:[%s284_s22] sm:$0xff]  ;;  %v943_v13 = vld [vmem:[#allocation2 + $0x4c] ss:$12 sps:$4 sm:$0xff]   ;;  %v945_v14 = vld [vmem:[#allocation2 + $0x48] ss:$12 sps:$4 sm:$0xff]   ;;  %v596_v46 = vshrl.u32 %v595_v45, 7 }
  0x30   : > { %v293_v3 = vpack.c.bf16 %v290_v2, %v290_v2  ;;  %v946_v15 = vld [vmem:[#allocation2 + $0x50] ss:$12 sps:$4 sm:$0xff]   ;;  %v949_v17 = vld [vmem:[#allocation2 + $0x60] ss:$12 sps:$4 sm:$0xff]   ;;  %v950_v18 = vld [vmem:[#allocation2 + $0x68] ss:$12 sps:$4 sm:$0xff]  }
  0x31   : > { %516 = vmatpush1.bf16.msra.mxu1 %v937_v8  ;;  %v947_v16 = vld [vmem:[#allocation2 + $0x64] ss:$12 sps:$4 sm:$0xff]   ;;  %v951_v19 = vld [vmem:[#allocation2 + $0x7c] ss:$12 sps:$4 sm:$0xff]   ;;  %v954_v21 = vld [vmem:[#allocation2 + $0x80] ss:$12 sps:$4 sm:$0xff]  }
  0x32   : > { %863 = vmatmul.mubr.msk.bf16.vlgmr.msra.gmra.mrb[0].mxu0 %vm307_vm1, %v293_v3  ;;  %517 = vmatprep.subr.bf16.mxu1 %v939_v10  ;;  %v953_v20 = vld [vmem:[#allocation2 + $0x78] ss:$12 sps:$4 sm:$0xff]   ;;  %v955_v22 = vld [vmem:[#allocation2 + $0x94] ss:$12 sps:$4 sm:$0xff]   ;;  %v957_v23 = vld [vmem:[#allocation2 + $0x90] ss:$12 sps:$4 sm:$0xff]  }
  0x33   : > { %867 = vmatpush3.bf16.msra.mxu0 %v934_v6  ;;  %882 = vmatprep.mubr.msk.bf16.mxu0 %vm1015_vm0, %v1014_v0  ;;  %v958_v24 = vld [vmem:[#allocation2 + $0x98] ss:$12 sps:$4 sm:$0xff]   ;;  %v961_v26 = vld [vmem:[#allocation2 + $0xa8] ss:$12 sps:$4 sm:$0xff]   ;;  %v962_v27 = vld [vmem:[#allocation2 + $0xb0] ss:$12 sps:$4 sm:$0xff]  }
  0x34   : > { %868 = vmatprep.subr.bf16.mxu0 %v1014_v0  ;;  %v959_v25 = vld [vmem:[#allocation2 + $0xac] ss:$12 sps:$4 sm:$0xff]   ;;  %v801_v29 = vld [vmem:[%s1178_s2] ss:$0 sm:$0xff]  ;;  %v969_v43 = vld [vmem:[%s1181_s5 + $0x30] sm:$0xff]   ;;  %vm597_vm2 = vcmp.ge.s32.totalorder %v596_v46, 2 }
  0x35   : > { %518 = vmatpush1.bf16.msra.mxu1 %v941_v11  ;;  %v963_v36 = vld [vmem:[%s1181_s5] sm:$0xff]   ;;  %v964_v38 = vld [vmem:[%s1181_s5 + $0x8] sm:$0xff]   ;;  %v966_v40 = vld [vmem:[%s1181_s5 + $0x18] sm:$0xff]   ;;  %vm600_vm3 = vcmp.ge.s32.totalorder %v596_v46, 1  ;;  %s800_s28 = sshll.u32 %s1192_s25, 2 }
  0x36   : > { %519 = vmatprep.subr.bf16.mxu1 %v943_v13  ;;  %v967_v41 = vld [vmem:[%s1181_s5 + $0x20] sm:$0xff]   ;;  %v968_v42 = vld [vmem:[%s1181_s5 + $0x28] sm:$0xff]   ;;  %v970_v44 = vld [vmem:[%s1181_s5 + $0x38] sm:$0xff]   ;;  %s288_s8 = scalar_lea.vmem %s1183_s7, %s800_s28 }
  0x37   : > { %869 = vmatpush3.bf16.msra.mxu0 %v938_v9  ;;  %v828_v60 = vld [vmem:[%s1180_s4] ss:$0 sm:$0xff] }
  0x38   : > { %870 = vmatprep.subr.bf16.mxu0 %v1014_v0  ;;  %v829_v1 = vld [vmem:[%s1182_s6] ss:$0 sm:$0xff] }
  0x39   : > { %520 = vmatpush1.bf16.msra.mxu1 %v945_v14 }
  0x3a   : > { %521 = vmatprep.subr.bf16.mxu1 %v947_v16 }
  0x3b   : > { %871 = vmatpush3.bf16.msra.mxu0 %v942_v12 }
  0x3c   : > { %872 = vmatprep.subr.bf16.mxu0 %v1014_v0 }
  0x3d   : > { %522 = vmatpush1.bf16.msra.mxu1 %v949_v17 }
  0x3e   : > { %523 = vmatprep.subr.bf16.mxu1 %v951_v19 }
  0x3f   : > { %873 = vmatpush3.bf16.msra.mxu0 %v946_v15 }
  0x40   : > { %874 = vmatprep.subr.bf16.mxu0 %v1014_v0 }
  0x41   : > { %524 = vmatpush1.bf16.msra.mxu1 %v953_v20 }
  0x42   : > { %525 = vmatprep.subr.bf16.mxu1 %v955_v22 }
  0x43   : > { %875 = vmatpush3.bf16.msra.mxu0 %v950_v18 }
  0x44   : > { %876 = vmatprep.subr.bf16.mxu0 %v1014_v0 }
  0x45   : > { %526 = vmatpush1.bf16.msra.mxu1 %v957_v23 }
  0x46   : > { %527 = vmatprep.subr.bf16.mxu1 %v959_v25 }
  0x47   : > { %877 = vmatpush3.bf16.msra.mxu0 %v954_v21 }
  0x48   : > { %878 = vmatprep.subr.bf16.mxu0 %v1014_v0 }
  0x49   : > { %528 = vmatpush1.bf16.msra.mxu1 %v961_v26 }
  0x4a   : > { %886 = vmatprep.subr.bf16.mxu1 %v1014_v0 }
  0x4b   : > { %879 = vmatpush3.bf16.msra.mxu0 %v958_v24 }
  0x4c   : > { %880 = vmatprep.subr.bf16.mxu0 %v1014_v0 }
  0x4f   : > { %881 = vmatpush3.bf16.msra.mxu0 %v962_v27 }
 0x105   : > { %v345_v30 = vpop.f32.mrb[0].mxu0 }
 0x106   : > { %v346_v31 = vadd.f32 %v801_v29, %v345_v30  ;;  %v864_v32 = vpop.f32.mrb[1].mxu0 }
 0x107   : > { %v348_v33 = vpop.f32.mrb[2].mxu0 }
 0x108   : > { %v351_v34 = vmax.f32 %v346_v31, 0.0  ;;  %v865_v35 = vpop.f32.mrb[3].mxu0 }
 0x10a   : > { %v384_v37 = vpack.c.bf16 %v351_v34, %v351_v34 }
 0x10c   : > { %546 = vmatmul.mubr.bf16.vlgmr.msra.gmra.mrb[0].mxu1 %v384_v37  ;;  %883 = vmatmul.mubr.bf16.vlgmr.msra.gmra.mrb[4].mxu0 %v384_v37 }
 0x10d   : > { %887 = vmatpush3.bf16.msra.mxu1 %v963_v36  ;;  %902 = vmatprep.mubr.msk.bf16.mxu1 %vm1015_vm0, %v1014_v0 }
 0x10e   : > { %888 = vmatprep.subr.bf16.mxu1 %v1014_v0 }
 0x111   : > { %889 = vmatpush3.bf16.msra.mxu1 %v964_v38 }
 0x112   : > { %890 = vmatprep.subr.bf16.mxu1 %v1014_v0 }
 0x115   : > { %891 = vmatpush3.bf16.msra.mxu1 %v965_v39 }
 0x116   : > { %892 = vmatprep.subr.bf16.mxu1 %v1014_v0 }
 0x119   : > { %893 = vmatpush3.bf16.msra.mxu1 %v966_v40 }
 0x11a   : > { %894 = vmatprep.subr.bf16.mxu1 %v1014_v0 }
 0x11d   : > { %895 = vmatpush3.bf16.msra.mxu1 %v967_v41 }
 0x11e   : > { %896 = vmatprep.subr.bf16.mxu1 %v1014_v0 }
 0x121   : > { %897 = vmatpush3.bf16.msra.mxu1 %v968_v42 }
 0x122   : > { %898 = vmatprep.subr.bf16.mxu1 %v1014_v0 }
 0x125   : > { %899 = vmatpush3.bf16.msra.mxu1 %v969_v43 }
 0x126   : > { %900 = vmatprep.subr.bf16.mxu1 %v1014_v0 }
 0x129   : > { %901 = vmatpush3.bf16.msra.mxu1 %v970_v44 }
 0x1df   : > { %v547_v47 = vpop.f32.mrb[0].mxu1  ;;  %v588_v48 = vpop.f32.mrb[4].mxu0 }
 0x1e0   : > { %v594_v49 = vrot.slane %v547_v47, 6  ;;  %v549_v50 = vpop.f32.mrb[1].mxu1  ;;  %v884_v51 = vpop.f32.mrb[5].mxu0 }
 0x1e1   : > { %v599_v52 = vrot.slane %v549_v50, 7  ;;  %v551_v53 = vpop.f32.mrb[2].mxu1  ;;  %v591_v54 = vpop.f32.mrb[6].mxu0 }
 0x1e2   : > { %v598_v55 = vsel %vm597_vm2, %v594_v49, 0.0  ;;  %v552_v56 = vpop.f32.mrb[3].mxu1  ;;  %v885_v57 = vpop.f32.mrb[7].mxu0 }
 0x1e3   : > { %v601_v58 = vsel %vm600_vm3, %v599_v52, 0.0 }
 0x1e4   : > { %v602_v59 = vadd.f32 %v601_v58, %v598_v55 }
 0x1e6   : > { %v603_v61 = vadd.f32 %v602_v59, %v588_v48 }
 0x1e8   : > { %v611_v62 = vadd.f32 %v828_v60, %v603_v61 }
 0x1ea   : > { %v612_v63 = vmax.f32 %v611_v62, 0.0 }
 0x1ec   : > { %v629_v0 = vpack.c.bf16 %v612_v63, %v612_v63 }
 0x1ee   : > { %903 = vmatmul.mubr.bf16.vlgmr.msra.gmra.mrb[4].mxu1 %v629_v0 }
 0x2c1   : > { %v719_v2 = vpop.f32.mrb[4].mxu1 }
 0x2c2   : > { %v720_v3 = vadd.f32 %v829_v1, %v719_v2  ;;  %v904_v4 = vpop.f32.mrb[5].mxu1 }
 0x2c3   : > { %v722_v5 = vpop.f32.mrb[6].mxu1 }
 0x2c4   : > { %v725_v6 = vpack.c.bf16 %v720_v3, %v720_v3  ;;  %v905_v7 = vpop.f32.mrb[7].mxu1 }
 0x2c6   : > { %726 = vst [vmem:[%s288_s8] sm:$0xf] %v725_v6 }
 0x2c7 PF: > { %s18_s24 = sadd.s32 1, %s1009_s24  }
 0x2c8   : > { %p15_p3 = scmp.ge.s32.totalorder %s18_s24, 4  }
 0x2ca   :  { %17 = sbr.rel (!%p15_p3) target bundleno = 1 (0x1), region = 83 }
 0x2d1   :  { %746 = vsyncpa [#allocation3], 1 }
 0x2d2   :  { %748 = vsyncpa [#allocation3 + $0x1], 1 }

// kernel: dctts_forward.4
= control target key start
LH: loop header
LB: loop body
LE: loop exit
PB: predicated region body
PF: predicated region fallthrough
CT: control target
= control target key end

     0   :  { %s1039_s24 = smov 0   ;;  %s1209_s0 = inlined_call_operand.vmem [shape: bf16[2,8,32], index: 0, kind: input, shape index: {}]   ;;  %s1210_s1 = inlined_call_operand.vmem [shape: bf16[32,128], index: 1, kind: input, shape index: {}]   ;;  %s1211_s2 = inlined_call_operand.vmem [shape: f32[1,128], index: 2, kind: input, shape index: {}]   ;;  %s1212_s3 = inlined_call_operand.vmem [shape: bf16[128,384], index: 3, kind: input, shape index: {}]   ;;  %s1213_s4 = inlined_call_operand.vmem [shape: f32[1,128], index: 4, kind: input, shape index: {}]   ;;  %s1214_s5 = inlined_call_operand.vmem [shape: bf16[128,256], index: 5, kind: input, shape index: {}]   ;;  %s1215_s6 = inlined_call_operand.vmem [shape: f32[1,256], index: 6, kind: input, shape index: {}]   ;;  %s1216_s7 = inlined_call_operand.vmem [shape: bf16[2,8,256], index: 7, kind: output, shape index: {}]  }
   0x1 LB: > { %s821_s25 = sadd.s32 4294967295, %s994_s24   ;;  %p825_p0 = scmp.ge.s32.totalorder %s994_s24, 1  ;;  %s994_s24 = sphi %s1039_s24, %s17_s24  }
   0x2   : > { %p236_p1 = scmp.lt.s32.totalorder %s994_s24, 3 }
   0x4   : > { %p237_p2 = pnand %p825_p0, %p236_p1 }
   0x5   : > { %v930_v0 = vld [vmem:[%s1210_s1] sm:$0xff] (!%p237_p2)   ;;  %v996_v1 = vmov (!%p237_p2), 0.0   ;;  %v931_v2 = vld [vmem:[%s1210_s1 + $0x8] sm:$0xff] (!%p237_p2)   ;;  %vm997_vm0 = vmmov (!%p237_p2), 0   ;;  %p267_p3 = scmp.lt.s32.totalorder (!%p237_p2), %s821_s25, 1  ;;  %vm301_vm1 = vcmask (!%p237_p2), 261120   ;;  %v589_v53 = vlaneseq (!%p237_p2) }
   0x6   : > { %240 = sbr.rel (%p237_p2) target bundleno = 678 (0x2a6), region = 48  ;;  %891 = vmatprep.subr.bf16.mxu0 (!%p237_p2), %v996_v1  ;;  %895 = vmatprep.mubr.msk.bf16.mxu0 (!%p237_p2), %vm997_vm0, %v996_v1  ;;  %v932_v3 = vld [vmem:[%s1212_s3 + $0x4] ss:$12 sps:$4 sm:$0xff] (!%p237_p2)   ;;  %v934_v4 = vld [vmem:[%s1212_s3] ss:$12 sps:$4 sm:$0xff] (!%p237_p2)   ;;  %v998_v28 = vmov (!%p237_p2), 0  }
   0x7   : > { %892 = vmatpush3.bf16.msra.mxu0 (!%p237_p2), %v930_v0  ;;  %507 = vmatprep.subr.bf16.mxu1 (!%p237_p2), %v932_v3  ;;  %v936_v5 = vld [vmem:[%s1212_s3 + $0x1c] ss:$12 sps:$4 sm:$0xff] (!%p237_p2)   ;;  %v938_v6 = vld [vmem:[%s1212_s3 + $0x18] ss:$12 sps:$4 sm:$0xff] (!%p237_p2)   ;;  %v940_v8 = vld [vmem:[%s1212_s3 + $0x34] ss:$12 sps:$4 sm:$0xff] (!%p237_p2)  }
   0x8   : > { %893 = vmatprep.subr.bf16.mxu0 (!%p237_p2), %v996_v1  ;;  %508 = vmatpush1.bf16.msra.mxu1 (!%p237_p2), %v934_v4  ;;  %v935_v7 = vld [vmem:[%s1212_s3 + $0x8] ss:$12 sps:$4 sm:$0xff] (!%p237_p2)   ;;  %v942_v10 = vld [vmem:[%s1212_s3 + $0x30] ss:$12 sps:$4 sm:$0xff] (!%p237_p2)   ;;  %v939_v11 = vld [vmem:[%s1212_s3 + $0x20] ss:$12 sps:$4 sm:$0xff] (!%p237_p2)  }
   0x9   : > { %509 = vmatprep.subr.bf16.mxu1 (!%p237_p2), %v936_v5  ;;  %v944_v12 = vld [vmem:[%s1212_s3 + $0x4c] ss:$12 sps:$4 sm:$0xff] (!%p237_p2)   ;;  %v946_v14 = vld [vmem:[%s1212_s3 + $0x48] ss:$12 sps:$4 sm:$0xff] (!%p237_p2)   ;;  %v948_v15 = vld [vmem:[%s1212_s3 + $0x64] ss:$12 sps:$4 sm:$0xff] (!%p237_p2)   ;;  %539 = vmatprep.mubr.bf16.mxu1 (!%p237_p2), %v998_v28 }
   0xa   : > { %v943_v13 = vld [vmem:[%s1212_s3 + $0x38] ss:$12 sps:$4 sm:$0xff] (!%p237_p2)   ;;  %v947_v16 = vld [vmem:[%s1212_s3 + $0x50] ss:$12 sps:$4 sm:$0xff] (!%p237_p2)   ;;  %v950_v17 = vld [vmem:[%s1212_s3 + $0x60] ss:$12 sps:$4 sm:$0xff] (!%p237_p2)  }
   0xb   : > { %894 = vmatpush3.bf16.msra.mxu0 (!%p237_p2), %v931_v2  ;;  %v952_v18 = vld [vmem:[%s1212_s3 + $0x7c] ss:$12 sps:$4 sm:$0xff] (!%p237_p2)   ;;  %v954_v19 = vld [vmem:[%s1212_s3 + $0x78] ss:$12 sps:$4 sm:$0xff] (!%p237_p2)   ;;  %v956_v21 = vld [vmem:[%s1212_s3 + $0x94] ss:$12 sps:$4 sm:$0xff] (!%p237_p2)  }
   0xc   : > { %899 = vmatprep.subr.bf16.mxu0 (!%p237_p2), %v996_v1  ;;  %510 = vmatpush1.bf16.msra.mxu1 (!%p237_p2), %v938_v6  ;;  %v951_v20 = vld [vmem:[%s1212_s3 + $0x68] ss:$12 sps:$4 sm:$0xff] (!%p237_p2)   ;;  %v955_v22 = vld [vmem:[%s1212_s3 + $0x80] ss:$12 sps:$4 sm:$0xff] (!%p237_p2)   ;;  %v958_v23 = vld [vmem:[%s1212_s3 + $0x90] ss:$12 sps:$4 sm:$0xff] (!%p237_p2)  }
   0xd   : > { %s1218_s25 = smov (!%p267_p3, %s821_s25), 1  ;;  %511 = vmatprep.subr.bf16.mxu1 %v940_v8  ;;  %v959_v24 = vld [vmem:[%s1212_s3 + $0x98] ss:$12 sps:$4 sm:$0xff]   ;;  %v962_v26 = vld [vmem:[%s1212_s3 + $0xa8] ss:$12 sps:$4 sm:$0xff]   ;;  %v590_v54 = vshrl.u32 %v589_v53, 7 }
   0xe   : > { %s826_s15 = sshll.u32 %s1218_s25, 2  ;;  %v960_v25 = vld [vmem:[%s1212_s3 + $0xac] ss:$12 sps:$4 sm:$0xff]   ;;  %v963_v27 = vld [vmem:[%s1212_s3 + $0xb0] ss:$12 sps:$4 sm:$0xff]   ;;  %s877_s13 = sshll.u32 %s1218_s25, 3 }
   0xf   : > { %s270_s20 = scalar_lea.vmem %s1209_s0, %s826_s15  ;;  %v966_v29 = vld [vmem:[%s1214_s5 + $0x4] ss:$8 sps:$4 sm:$0xff]   ;;  %v829_v30 = vld [vmem:[%s1211_s2] ss:$0 sm:$0xff]  ;;  %v969_v39 = vld [vmem:[%s1214_s5 + $0x14] ss:$8 sps:$4 sm:$0xff]   ;;  %s275_s16 = scalar_lea.vmem %s1216_s7, %s877_s13 }
  0x10   : > { %v277_v9 = vld [vmem:[%s270_s20] sm:$0xf]  ;;  %512 = vmatpush1.bf16.msra.mxu1 %v942_v10  ;;  %v967_v40 = vld [vmem:[%s1214_s5 + $0x10] ss:$8 sps:$4 sm:$0xff]   ;;  %v972_v41 = vld [vmem:[%s1214_s5 + $0x24] ss:$8 sps:$4 sm:$0xff]  }
  0x11   : > { %896 = vmatmul.mubr.msk.bf16.vlgmr.msra.gmra.mrb[0].mxu0 %vm301_vm1, %v277_v9  ;;  %513 = vmatprep.subr.bf16.mxu1 %v944_v12  ;;  %v964_v37 = vld [vmem:[%s1214_s5] ss:$8 sps:$4 sm:$0xff]   ;;  %v975_v43 = vld [vmem:[%s1214_s5 + $0x34] ss:$8 sps:$4 sm:$0xff]   ;;  %v973_v44 = vld [vmem:[%s1214_s5 + $0x30] ss:$8 sps:$4 sm:$0xff]  }
  0x12   : > { %900 = vmatpush3.bf16.msra.mxu0 %v935_v7  ;;  %915 = vmatprep.mubr.msk.bf16.mxu0 %vm997_vm0, %v996_v1  ;;  %v970_v42 = vld [vmem:[%s1214_s5 + $0x20] ss:$8 sps:$4 sm:$0xff]   ;;  %v978_v45 = vld [vmem:[%s1214_s5 + $0x44] ss:$8 sps:$4 sm:$0xff]   ;;  %v981_v47 = vld [vmem:[%s1214_s5 + $0x54] ss:$8 sps:$4 sm:$0xff]  }
  0x13   : > { %901 = vmatprep.subr.bf16.mxu0 %v996_v1  ;;  %v976_v46 = vld [vmem:[%s1214_s5 + $0x40] ss:$8 sps:$4 sm:$0xff]   ;;  %v979_v48 = vld [vmem:[%s1214_s5 + $0x50] ss:$8 sps:$4 sm:$0xff]   ;;  %v984_v49 = vld [vmem:[%s1214_s5 + $0x64] ss:$8 sps:$4 sm:$0xff]  }
  0x14   : > { %514 = vmatpush1.bf16.msra.mxu1 %v946_v14  ;;  %v982_v50 = vld [vmem:[%s1214_s5 + $0x60] ss:$8 sps:$4 sm:$0xff]   ;;  %v987_v51 = vld [vmem:[%s1214_s5 + $0x74] ss:$8 sps:$4 sm:$0xff]   ;;  %v985_v52 = vld [vmem:[%s1214_s5 + $0x70] ss:$8 sps:$4 sm:$0xff]  }
  0x15   : > { %515 = vmatprep.subr.bf16.mxu1 %v948_v15  ;;  %vm591_vm2 = vcmp.ge.s32.totalorder %v590_v54, 1  ;;  %vm595_vm3 = vcmp.lt.s32.totalorder %v590_v54, 7  ;;  %v857_v4 = vld [vmem:[%s1213_s4] ss:$0 sm:$0xff]  ;;  %v628_v9 = vsub.s32 0, %v590_v54 }
  0x16   : > { %902 = vmatpush3.bf16.msra.mxu0 %v939_v11  ;;  %v624_v10 = vld [vmem:[%s1215_s6] sm:$0x3]  ;;  %v632_v11 = vsub.s32 1, %v590_v54 }
  0x17   : > { %903 = vmatprep.subr.bf16.mxu0 %v996_v1  ;;  %v629_v12 = vrot.slane %v624_v10, %v628_v9 }
  0x18   : > { %516 = vmatpush1.bf16.msra.mxu1 %v950_v17 }
  0x19   : > { %517 = vmatprep.subr.bf16.mxu1 %v952_v18 }
  0x1a   : > { %904 = vmatpush3.bf16.msra.mxu0 %v943_v13  ;;  %v633_v13 = vrot.slane %v624_v10, %v632_v11 }
  0x1b   : > { %905 = vmatprep.subr.bf16.mxu0 %v996_v1 }
  0x1c   : > { %518 = vmatpush1.bf16.msra.mxu1 %v954_v19 }
  0x1d   : > { %519 = vmatprep.subr.bf16.mxu1 %v956_v21 }
  0x1e   : > { %906 = vmatpush3.bf16.msra.mxu0 %v947_v16 }
  0x1f   : > { %907 = vmatprep.subr.bf16.mxu0 %v996_v1 }
  0x20   : > { %520 = vmatpush1.bf16.msra.mxu1 %v958_v23 }
  0x21   : > { %521 = vmatprep.subr.bf16.mxu1 %v960_v25 }
  0x22   : > { %908 = vmatpush3.bf16.msra.mxu0 %v951_v20 }
  0x23   : > { %909 = vmatprep.subr.bf16.mxu0 %v996_v1 }
  0x24   : > { %522 = vmatpush1.bf16.msra.mxu1 %v962_v26 }
  0x25   : > { %716 = vmatprep.subr.bf16.mxu1 %v966_v29 }
  0x26   : > { %910 = vmatpush3.bf16.msra.mxu0 %v955_v22 }
  0x27   : > { %911 = vmatprep.subr.bf16.mxu0 %v996_v1 }
  0x2a   : > { %912 = vmatpush3.bf16.msra.mxu0 %v959_v24 }
  0x2b   : > { %913 = vmatprep.subr.bf16.mxu0 %v996_v1 }
  0x2e   : > { %914 = vmatpush3.bf16.msra.mxu0 %v963_v27 }
  0xe4   : > { %v339_v31 = vpop.f32.mrb[0].mxu0 }
  0xe5   : > { %v340_v32 = vadd.f32 %v829_v30, %v339_v31  ;;  %v897_v33 = vpop.f32.mrb[1].mxu0 }
  0xe6   : > { %v342_v34 = vpop.f32.mrb[2].mxu0 }
  0xe7   : > { %v345_v35 = vmax.f32 %v340_v32, 0.0  ;;  %v898_v36 = vpop.f32.mrb[3].mxu0 }
  0xe9   : > { %v378_v38 = vpack.c.bf16 %v345_v35, %v345_v35 }
  0xeb   : > { %540 = vmatmul.mubr.bf16.vlgmr.msra.gmra.mrb[0].mxu1 %v378_v38  ;;  %916 = vmatmul.mubr.bf16.vlgmr.msra.gmra.mrb[4].mxu0 %v378_v38 }
  0xec   : > { %717 = vmatpush1.bf16.msra.mxu1 %v964_v37  ;;  %748 = vmatprep.mubr.bf16.mxu1 %v998_v28 }
  0xed   : > { %718 = vmatprep.subr.bf16.mxu1 %v969_v39 }
  0xf0   : > { %719 = vmatpush1.bf16.msra.mxu1 %v967_v40 }
  0xf1   : > { %720 = vmatprep.subr.bf16.mxu1 %v972_v41 }
  0xf4   : > { %721 = vmatpush1.bf16.msra.mxu1 %v970_v42 }
  0xf5   : > { %722 = vmatprep.subr.bf16.mxu1 %v975_v43 }
  0xf8   : > { %723 = vmatpush1.bf16.msra.mxu1 %v973_v44 }
  0xf9   : > { %724 = vmatprep.subr.bf16.mxu1 %v978_v45 }
  0xfc   : > { %725 = vmatpush1.bf16.msra.mxu1 %v976_v46 }
  0xfd   : > { %726 = vmatprep.subr.bf16.mxu1 %v981_v47 }
 0x100   : > { %727 = vmatpush1.bf16.msra.mxu1 %v979_v48 }
 0x101   : > { %728 = vmatprep.subr.bf16.mxu1 %v984_v49 }
 0x104   : > { %729 = vmatpush1.bf16.msra.mxu1 %v982_v50 }
 0x105   : > { %730 = vmatprep.subr.bf16.mxu1 %v987_v51 }
 0x108   : > { %731 = vmatpush1.bf16.msra.mxu1 %v985_v52 }
 0x1be   : > { %v541_v55 = vpop.f32.mrb[0].mxu1  ;;  %v582_v56 = vpop.f32.mrb[4].mxu0 }
 0x1bf   : > { %v588_v57 = vrot.slane %v541_v55, 7  ;;  %v594_v58 = vrot.slane %v582_v56, 1  ;;  %v543_v59 = vpop.f32.mrb[1].mxu1  ;;  %v917_v60 = vpop.f32.mrb[5].mxu0 }
 0x1c0   : > { %v545_v61 = vpop.f32.mrb[2].mxu1  ;;  %v585_v62 = vpop.f32.mrb[6].mxu0 }
 0x1c1   : > { %v592_v63 = vsel %vm591_vm2, %v588_v57, 0.0  ;;  %v546_v0 = vpop.f32.mrb[3].mxu1  ;;  %v918_v1 = vpop.f32.mrb[7].mxu0  ;;  %v596_v3 = vsel %vm595_vm3, %v594_v58, 0.0 }
 0x1c2   : > { %v593_v2 = vadd.f32 %v592_v63, %v543_v59 }
 0x1c4   : > { %v597_v5 = vadd.f32 %v596_v3, %v593_v2 }
 0x1c6   : > { %v605_v6 = vadd.f32 %v857_v4, %v597_v5 }
 0x1c8   : > { %v606_v7 = vmax.f32 %v605_v6, 0.0 }
 0x1ca   : > { %v623_v8 = vpack.c.bf16 %v606_v7, %v606_v7 }
 0x1cc   : > { %749 = vmatmul.mubr.bf16.vlgmr.msra.gmra.mrb[4].mxu1 %v623_v8 }
 0x29f   : > { %v750_v14 = vpop.f32.mrb[4].mxu1 }
 0x2a0   : > { %v751_v15 = vadd.f32 %v750_v14, %v629_v12  ;;  %v752_v16 = vpop.f32.mrb[5].mxu1 }
 0x2a1   : > { %v753_v17 = vadd.f32 %v752_v16, %v633_v13  ;;  %v754_v18 = vpop.f32.mrb[6].mxu1 }
 0x2a2   : > { %v755_v19 = vpop.f32.mrb[7].mxu1 }
 0x2a3   : > { %v878_v20 = vpack.c.bf16 %v753_v17, %v751_v15 }
 0x2a5   : > { %765 = vst [vmem:[%s275_s16] sm:$0xff] %v878_v20 }
 0x2a6 PF: > { %s17_s24 = sadd.s32 1, %s994_s24  }
 0x2a7   : > { %p14_p4 = scmp.ge.s32.totalorder %s17_s24, 4  }
 0x2a9   :  { %16 = sbr.rel (!%p14_p4) target bundleno = 1 (0x1), region = 78 }

// kernel: dctts_forward.7
= control target key start
LH: loop header
LB: loop body
LE: loop exit
PB: predicated region body
PF: predicated region fallthrough
CT: control target
= control target key end

     0   :  { %s3930_s0 = inlined_call_operand.vmem [shape: bf16[2,8,128], index: 0, kind: input, shape index: {}]   ;;  %s3931_s1 = inlined_call_operand.vmem [shape: bf16[2,8,128], index: 1, kind: input, shape index: {}]   ;;  %s3932_s2 = inlined_call_operand.vmem [shape: f32[2,8,1], index: 2, kind: input, shape index: {}]   ;;  %s3933_s3 = inlined_call_operand.vmem [shape: f32[1,32], index: 3, kind: input, shape index: {}]   ;;  %s3934_s4 = inlined_call_operand.hbm [shape: f32[1,32], index: 4, kind: input, shape index: {}]   ;;  %s3935_s5 = inlined_call_operand.hbm [shape: bf16[32,128], index: 5, kind: input, shape index: {}]   ;;  %s3936_s6 = inlined_call_operand.hbm [shape: f32[1,128], index: 6, kind: input, shape index: {}]   ;;  %s3937_s7 = inlined_call_operand.vmem [shape: bf16[128,128], index: 7, kind: input, shape index: {}]   ;;  %s3938_s8 = inlined_call_operand.vmem [shape: bf16[128,128], index: 8, kind: input, shape index: {}]   ;;  %s3939_s9 = inlined_call_operand.vmem [shape: bf16[128,128], index: 9, kind: input, shape index: {}]   ;;  %s3940_s10 = inlined_call_operand.hbm [shape: f32[1,128], index: 10, kind: input, shape index: {}]   ;;  %s3941_s11 = inlined_call_operand.vmem [shape: bf16[128,384], index: 11, kind: input, shape index: {}]   ;;  %s3942_s12 = inlined_call_operand.hbm [shape: f32[1,128], index: 12, kind: input, shape index: {}]   ;;  %s3943_s13 = inlined_call_operand.vmem [shape: bf16[128,16], index: 13, kind: input, shape index: {}]   ;;  %s3944_s14 = inlined_call_operand.hbm [shape: f32[1,16], index: 14, kind: input, shape index: {}]   ;;  %s3945_s15 = inlined_call_operand.vmem [shape: bf16[16,128], index: 15, kind: input, shape index: {}]   ;;  %s3946_s16 = inlined_call_operand.vmem [shape: f32[1,128], index: 16, kind: input, shape index: {}]   ;;  %s3947_s17 = inlined_call_operand.vmem [shape: bf16[128,384], index: 17, kind: input, shape index: {}]   ;;  %s3948_s18 = inlined_call_operand.vmem [shape: f32[1,128], index: 18, kind: input, shape index: {}]   ;;  %s3949_s19 = inlined_call_operand.vmem [shape: bf16[128,16], index: 19, kind: input, shape index: {}]   ;;  %s3950_s20 = inlined_call_operand.vmem [shape: f32[1,16], index: 20, kind: input, shape index: {}]   ;;  %s3951_s21 = inlined_call_operand.hbm [shape: f32[2,8,16], index: 21, kind: output, shape index: {0}]   ;;  %s3952_s22 = inlined_call_operand.hbm [shape: f32[2,8,16], index: 22, kind: output, shape index: {1}]  }
   0x1   :  { %3972 = sst [smem:[#allocation29_spill]] %s3930_s0 }
   0x2   :  { %3973 = sst [smem:[#allocation30_spill]] %s3931_s1 }
   0x3   :  { %3974 = sst [smem:[#allocation31_spill]] %s3932_s2 }
   0x4   :  { %3975 = sst [smem:[#allocation32_spill]] %s3933_s3 }
   0x5   :  { %3976 = sst [smem:[#allocation33_spill]] %s3934_s4 }
   0x6   :  { %3977 = sst [smem:[#allocation34_spill]] %s3935_s5 }
   0x7   :  { %3978 = sst [smem:[#allocation35_spill]] %s3936_s6 }
   0x8   :  { %3979 = sst [smem:[#allocation36_spill]] %s3948_s18 }
   0x9   :  { %3980 = sst [smem:[#allocation37_spill]] %s3949_s19 }
   0xa   :  { %3981 = sst [smem:[#allocation38_spill]] %s3950_s20 }
   0xb   :  { %3982 = sst [smem:[#allocation39_spill]] %s3951_s21 }
   0xc   :  { %3983 = sst [smem:[#allocation40_spill]] %s3952_s22 }
   0xd   :  { %28 = vsyncpa [#allocation3], 0 }
   0xe   :  { %29 = vsyncpa [#allocation6], 0 }
   0xf   :  { %30 = vsyncpa [#allocation9], 0 }
  0x10   :  { %31 = vsyncpa [#allocation12], 0 }
  0x11   :  { %32 = vsyncpa [#allocation4], 0 }
  0x12   :  { %34 = vsyncpa [#allocation4 + $0x1], 0 }
  0x13   :  { %35 = vsyncpa [#allocation15], 0 }
  0x14   :  { %37 = vsyncpa [#allocation15 + $0x1], 0  ;;  %s3243_s3 = smov 0   ;;  %s3245_s28 = smov 0  }
  0x15   :  { %s3247_s29 = smov 0   ;;  %s3249_s30 = smov 0  }
  0x16 LB: > { %3984 = sst [smem:[#allocation22_spill]] %s3101_s3  ;;  %s3264_s4 = sadd.s32 4294967295, %s3113_s30   ;;  %s3113_s30 = sphi %s3249_s30, %s4026_s30   ;;  %s3109_s29 = sphi %s3247_s29, %s4028_s29   ;;  %s3105_s28 = sphi %s3245_s28, %s4030_s28   ;;  %s3101_s3 = sphi %s3243_s3, %s4029_s3  }
  0x17   : > { %3985 = sst [smem:[#allocation23_spill]] %s3109_s29  ;;  %s2245_s0 = sadd.s32 4294967294, %s3113_s30  }
  0x18   : > { %3986 = sst [smem:[#allocation24_spill]] %s3113_s30  ;;  %s3268_s23 = sadd.s32 1, %s3113_s30  }
  0x19   : > { %3987 = sst [smem:[#allocation25_spill]] %s3268_s23  ;;  %s506_s1 = sadd.s32 1, %s3109_s29 }
  0x1a   : > { %s503_s5 = ssub.s32 %s3113_s30, %s3268_s23  ;;  %p516_p0 = scmp.ne.s32.totalorder %s3109_s29, %s3105_s28 }
  0x1b   : > { %p504_p1 = scmp.eq.s32.totalorder %s503_s5, 0  ;;  %p517_p2 = scmp.eq.s32.totalorder %s3264_s4, 1 }
  0x1c   : > { %p522_p3 = scmp.ne.s32.totalorder %s3105_s28, %s3101_s3  ;;  %p523_p4 = scmp.eq.s32.totalorder %s2245_s0, 1 }
  0x1d   : > { %s3279_s24 = scalar_select %p504_p1, %s3109_s29, %s506_s1  }
  0x1e   : > { %p3281_p5 = por %p517_p2, %p516_p0  ;;  %p3285_p6 = por %p523_p4, %p522_p3 }
  0x1f   : > { %3988 = sst [smem:[#allocation26_spill]] %s3279_s24  ;;  %p2246_p7 = scmp.ge.s32.totalorder %s3113_s30, 1 }
  0x20   : > { %s3989_s6 = scalar_select %p3281_p5, 1, 0 }
  0x21   : > { %s3991_s25 = scalar_select %p3285_p6, 1, 0 }
  0x22   : > { %3990 = sst [smem:[#allocation27_spill]] %s3989_s6  ;;  %p556_p8 = scmp.lt.s32.totalorder %s3113_s30, 3 }
  0x23   : > { %3992 = sst [smem:[#allocation28_spill]] %s3991_s25  ;;  %p3963_p9 = scmp.eq.s32.totalorder %s3264_s4, 0 }
  0x24   : > { %p3292_p10 = pnand %p2246_p7, %p556_p8  ;;  %s3115_s2 = smov [#allocation5]  }
  0x25   : > { %s582_s27 = sshll.u32 %s3115_s2, 4  ;;  %s3116_s1 = smov [#allocation8]   ;;  %s3298_s27 = int_to_ptr.vmem [resolvable:$true] %s582_s27 }
  0x26   : > { %s3993_s26 = scalar_select %p3292_p10, 1, 0 }
  0x27   : > { %p2635_p11 = pneg %p3292_p10  ;;  %s616_s5 = sshll.u32 %s3116_s1, 4  ;;  %s3306_s5 = int_to_ptr.vmem [resolvable:$true] %s616_s5 }
  0x28   : > { %s3117_s24 = smov [#allocation2]   ;;  %s3995_s2 = sld [smem:[#allocation34_spill]] }
  0x29   : > { %p3302_p12 = pnand %p3963_p9, %p2635_p11  ;;  %s3308_s29 = sshll.u32 %s3117_s24, 4  ;;  %s573_s29 = int_to_ptr.vmem [resolvable:$true] %s3308_s29 }
  0x2b   : > { %p3318_p0 = pneg %p3302_p12 }
  0x2e   : > { %s2835_s3 = scalar_lea.hbm %s3995_s2, 256 }
  0x2f   : > { %p2836_p13 = scmp.ne.s32.totalorder %s3995_s2, %s2835_s3  ;;  %p2842_p3 = scmp.lt.u32.totalorder %s2835_s3, %s3995_s2 }
  0x31   : > { %p2838_p1 = pnand %p3318_p0, %p2836_p13 }
  0x33   : > { %p2839_p2 = pneg %p2838_p1 }
  0x35   : > { %p2844_p4 = pnand %p2842_p3, %p2839_p2 }
  0x37   : > { %2847 = shalt.err (!%p2844_p4)
}
  0x38   : > { %s2848_s22 = scalar_lea.vmem %s3298_s27, 256  ;;  %p2856_p9 = scmp.lt.s32.totalorder %s3298_s27, %s3298_s27 }
  0x39   : > { %p2849_p7 = scmp.ne.s32.totalorder %s3298_s27, %s2848_s22  ;;  %p2857_p6 = scmp.lt.s32.totalorder %s2848_s22, %s2848_s22 }
  0x3b   : > { %p2851_p8 = pnand %p2849_p7, %p3318_p0  ;;  %p2858_p13 = por %p2857_p6, %p2856_p9 }
  0x3d   : > { %p2852_p11 = pneg %p2851_p8 }
  0x3f   : > { %p2859_p1 = pnand %p2858_p13, %p2852_p11 }
  0x41   : > { %2862 = shalt.err (!%p2859_p1)
}
  0x42   : > { %s3118_s30 = smov 64   ;;  %s3119_s3 = smov 4  }
  0x43   : > { %2641 = dma.hbm_to_vmem [thread:$0]  (!%p3302_p12), %s3995_s2, 256, %s3298_s27, [#allocation6], %s3118_s30, %s3118_s30, %s3119_s3  }
  0x44   : > { %s2863_s21 = scalar_lea.hbm %s3940_s10, 16 }
  0x45   : > { %p2864_p6 = scmp.ne.s32.totalorder %s3940_s10, %s2863_s21  ;;  %p2870_p3 = scmp.lt.u32.totalorder %s2863_s21, %s3940_s10 }
  0x47   : > { %p2866_p9 = pnand %p2864_p6, %p3318_p0 }
  0x49   : > { %p2867_p2 = pneg %p2866_p9 }
  0x4b   : > { %p2872_p4 = pnand %p2870_p3, %p2867_p2 }
  0x4d   : > { %2875 = shalt.err (!%p2872_p4)
}
  0x4e   : > { %s2876_s27 = scalar_lea.vmem %s3306_s5, 16  ;;  %s2883_s18 = scalar_lea.vmem %s3306_s5, 32 }
  0x4f   : > { %p2877_p7 = scmp.ne.s32.totalorder %s3306_s5, %s2876_s27  ;;  %p2884_p13 = scmp.lt.s32.totalorder %s3306_s5, %s3306_s5 }
  0x50   : > { %p2885_p1 = scmp.lt.s32.totalorder %s2883_s18, %s2876_s27 }
  0x51   : > { %p2879_p8 = pnand %p2877_p7, %p3318_p0 }
  0x52   : > { %p2886_p6 = por %p2885_p1, %p2884_p13 }
  0x53   : > { %p2880_p11 = pneg %p2879_p8 }
  0x55   : > { %p2887_p9 = pnand %p2886_p6, %p2880_p11 }
  0x57   : > { %2890 = shalt.err (!%p2887_p9)
}
  0x58   : > { %2647 = dma.hbm_to_vmem [thread:$0]  (!%p3302_p12), %s3940_s10, 16, %s3306_s5, [#allocation9]  }
  0x59   : > { %s3997_s3 = sld [smem:[#allocation33_spill]] }
  0x5f   : > { %s3998_s23 = smov %s3997_s3  ;;  %s2891_s25 = scalar_lea.hbm %s3997_s3, 16 }
  0x60   : > { %p2892_p2 = scmp.ne.s32.totalorder %s3998_s23, %s2891_s25  ;;  %p2898_p7 = scmp.lt.u32.totalorder %s2891_s25, %s3998_s23 }
  0x62   : > { %p2894_p3 = pnand %p2892_p2, %p3318_p0 }
  0x64   : > { %p2895_p4 = pneg %p2894_p3 }
  0x66   : > { %p2900_p8 = pnand %p2898_p7, %p2895_p4 }
  0x68   : > { %2903 = shalt.err (!%p2900_p8)
}
  0x69   : > { %s2904_s18 = scalar_lea.vmem %s573_s29, 16  ;;  %s2911_s5 = scalar_lea.vmem %s573_s29, 32 }
  0x6a   : > { %p2905_p11 = scmp.ne.s32.totalorder %s573_s29, %s2904_s18  ;;  %p2912_p6 = scmp.lt.s32.totalorder %s573_s29, %s573_s29 }
  0x6b   : > { %p2913_p9 = scmp.lt.s32.totalorder %s2911_s5, %s2904_s18 }
  0x6c   : > { %p2907_p13 = pnand %p2905_p11, %p3318_p0 }
  0x6d   : > { %p2914_p5 = por %p2913_p9, %p2912_p6 }
  0x6e   : > { %p2908_p1 = pneg %p2907_p13 }
  0x70   : > { %p2915_p10 = pnand %p2914_p5, %p2908_p1 }
  0x72   : > { %2918 = shalt.err (!%p2915_p10)
}
  0x73   : > { %2638 = dma.hbm_to_vmem [thread:$0]  (!%p3302_p12), %s3998_s23, 16, %s573_s29, [#allocation3]  }
  0x74   : > { %s3120_s6 = smov [#allocation7]   ;;  %s3121_s3 = smov [#allocation10]  }
  0x75   : > { %s596_s30 = sshll.u32 %s3120_s6, 4  ;;  %s630_s25 = sshll.u32 %s3121_s3, 4  ;;  %s597_s30 = int_to_ptr.vmem [resolvable:$true] %s596_s30  ;;  %s631_s25 = int_to_ptr.vmem [resolvable:$true] %s630_s25 }
  0x76   : > { %s3999_s22 = sld [smem:[#allocation35_spill]] }
  0x7c   : > { %s2919_s27 = scalar_lea.hbm %s3999_s22, 16 }
  0x7d   : > { %p2920_p5 = scmp.ne.s32.totalorder %s3999_s22, %s2919_s27  ;;  %p2926_p3 = scmp.lt.u32.totalorder %s2919_s27, %s3999_s22 }
  0x7f   : > { %p2922_p10 = pnand %p2920_p5, %p3318_p0 }
  0x81   : > { %p2923_p2 = pneg %p2922_p10 }
  0x83   : > { %p2928_p4 = pnand %p2926_p3, %p2923_p2 }
  0x85   : > { %2931 = shalt.err (!%p2928_p4)
}
  0x86   : > { %s2932_s29 = scalar_lea.vmem %s597_s30, 16  ;;  %s2939_s21 = scalar_lea.vmem %s597_s30, 32 }
  0x87   : > { %p2933_p7 = scmp.ne.s32.totalorder %s597_s30, %s2932_s29  ;;  %p2940_p13 = scmp.lt.s32.totalorder %s597_s30, %s597_s30 }
  0x88   : > { %p2941_p1 = scmp.lt.s32.totalorder %s2939_s21, %s2932_s29 }
  0x89   : > { %p2935_p8 = pnand %p2933_p7, %p3318_p0 }
  0x8a   : > { %p2942_p6 = por %p2941_p1, %p2940_p13 }
  0x8b   : > { %p2936_p11 = pneg %p2935_p8 }
  0x8d   : > { %p2943_p9 = pnand %p2942_p6, %p2936_p11 }
  0x8f   : > { %2946 = shalt.err (!%p2943_p9)
}
  0x90   : > { %2644 = dma.hbm_to_vmem [thread:$0]  (!%p3302_p12), %s3999_s22, 16, %s597_s30, [#allocation6]  }
  0x91   : > { %s2947_s24 = scalar_lea.hbm %s3942_s12, 16 }
  0x92   : > { %p2948_p5 = scmp.ne.s32.totalorder %s3942_s12, %s2947_s24  ;;  %p2954_p3 = scmp.lt.u32.totalorder %s2947_s24, %s3942_s12 }
  0x94   : > { %p2950_p10 = pnand %p2948_p5, %p3318_p0 }
  0x96   : > { %p2951_p2 = pneg %p2950_p10 }
  0x98   : > { %p2956_p4 = pnand %p2954_p3, %p2951_p2 }
  0x9a   : > { %2959 = shalt.err (!%p2956_p4)
}
  0x9b   : > { %s2960_s29 = scalar_lea.vmem %s631_s25, 16  ;;  %s2967_s30 = scalar_lea.vmem %s631_s25, 32 }
  0x9c   : > { %p2961_p7 = scmp.ne.s32.totalorder %s631_s25, %s2960_s29  ;;  %p2968_p13 = scmp.lt.s32.totalorder %s631_s25, %s631_s25 }
  0x9d   : > { %p2969_p1 = scmp.lt.s32.totalorder %s2967_s30, %s2960_s29 }
  0x9e   : > { %p2963_p8 = pnand %p2961_p7, %p3318_p0 }
  0x9f   : > { %p2970_p6 = por %p2969_p1, %p2968_p13 }
  0xa0   : > { %p2964_p11 = pneg %p2963_p8 }
  0xa2   : > { %p2971_p9 = pnand %p2970_p6, %p2964_p11 }
  0xa4   : > { %2974 = shalt.err (!%p2971_p9)
}
  0xa5   : > { %2650 = dma.hbm_to_vmem [thread:$0]  (!%p3302_p12), %s3942_s12, 16, %s631_s25, [#allocation9]  }
  0xa6   : > { %s3122_s3 = smov [#allocation11]   ;;  %s2975_s27 = scalar_lea.hbm %s3944_s14, 16 }
  0xa7   : > { %s644_s2 = sshll.u32 %s3122_s3, 4  ;;  %p2976_p5 = scmp.ne.s32.totalorder %s3944_s14, %s2975_s27  ;;  %s645_s2 = int_to_ptr.vmem [resolvable:$true] %s644_s2 }
  0xa8   : > { %p2982_p3 = scmp.lt.u32.totalorder %s2975_s27, %s3944_s14 }
  0xa9   : > { %p2978_p10 = pnand %p2976_p5, %p3318_p0 }
  0xab   : > { %p2979_p2 = pneg %p2978_p10 }
  0xad   : > { %p2984_p4 = pnand %p2982_p3, %p2979_p2 }
  0xaf   : > { %2987 = shalt.err (!%p2984_p4)
}
  0xb0   : > { %s2988_s25 = scalar_lea.vmem %s645_s2, 16  ;;  %s2995_s30 = scalar_lea.vmem %s645_s2, 32 }
  0xb1   : > { %p2989_p7 = scmp.ne.s32.totalorder %s645_s2, %s2988_s25  ;;  %p2996_p13 = scmp.lt.s32.totalorder %s645_s2, %s645_s2 }
  0xb2   : > { %p2997_p1 = scmp.lt.s32.totalorder %s2995_s30, %s2988_s25 }
  0xb3   : > { %p2991_p8 = pnand %p2989_p7, %p3318_p0 }
  0xb4   : > { %p2998_p6 = por %p2997_p1, %p2996_p13 }
  0xb5   : > { %p2992_p11 = pneg %p2991_p8 }
  0xb7   : > { %p2999_p9 = pnand %p2998_p6, %p2992_p11 }
  0xb9   : > { %3002 = shalt.err (!%p2999_p9)
}
  0xba   : > { %2653 = dma.hbm_to_vmem [thread:$0]  (!%p3302_p12), %s3944_s14, 16, %s645_s2, [#allocation12]  }
  0xbb   : > { %p4000_p5 = scmp.ne.s32.totalorder %s3993_s26, 0 }
  0xbc   : > { %p4001_p10 = scmp.eq.s32.totalorder (!%p4000_p5), %s3264_s4, 0 }
  0xbd   : > { %696 = sbr.rel (%p4000_p5) target bundleno = 1987 (0x7c3), region = 104 }
  0xc4   : > { %3076 = dma.done.wait (%p4001_p10), [#allocation3], 16   ;;  %p4002_p0 = pmov %p4001_p10 }
  0xc6   : > { %3078 = vsyncadd (%p4002_p0), [#allocation3], 4294967280  ;;  %p4003_p2 = pmov %p4002_p0 }
  0xc7   : > { %p4004_p3 = pmov %p4002_p0 }
  0xc8   : > { %3080 = dma.done.wait (%p4003_p2), [#allocation6], 272  }
  0xc9   : > { %3082 = vsyncadd (%p4004_p3), [#allocation6], 4294967024  ;;  %p4005_p4 = pmov %p4002_p0 }
  0xca   : > { %p4006_p12 = pmov %p4002_p0 }
  0xcb   : > { %3084 = dma.done.wait (%p4005_p4), [#allocation9], 32  }
  0xcc   : > { %3086 = vsyncadd (%p4006_p12), [#allocation9], 4294967264  ;;  %p4007_p7 = pmov %p4002_p0 }
  0xcd   : > { %p4008_p8 = pmov %p4002_p0 }
  0xce   : > { %3088 = dma.done.wait (%p4007_p7), [#allocation12], 16  }
  0xcf   : > { %3090 = vsyncadd (%p4008_p8), [#allocation12], 4294967280  ;;  %p790_p11 = scmp.lt.s32.totalorder %s3264_s4, 1  ;;  %v3123_v0 = vmov 0   ;;  %s4009_s2 = sld [smem:[#allocation31_spill]]  ;;  %v3124_v2 = vmov 0.0  }
  0xd0   : > { %2717 = vset.pattern.permute.xlu0 %v3123_v0  ;;  %2484 = vmatprep.subr.bf16.mxu1 %v3124_v2  ;;  %v2718_v3 = vld [vmem:[#allocation5] sm:$0xff]   ;;  %v2719_v4 = vld [vmem:[#allocation5 + $0x8] sm:$0xff]   ;;  %vm3125_vm0 = vmmov 0   ;;  %v2723_v8 = vld [vmem:[%s3938_s8 + $0x18] sm:$0xff]   ;;  %s4010_s19 = sld [smem:[#allocation30_spill]]  ;;  %s4012_s25 = sld [smem:[#allocation32_spill]] }
  0xd1   : > { %s3457_s20 = scalar_select %p790_p11, %s3264_s4, 1  ;;  %2444 = vmatprep.subr.bf16.mxu0 %v3124_v2  ;;  %2485 = vmatpush3.bf16.msra.mxu1 %v2718_v3  ;;  %v2720_v5 = vld [vmem:[%s3938_s8] sm:$0xff]   ;;  %v2721_v6 = vld [vmem:[%s3938_s8 + $0x8] sm:$0xff]   ;;  %v2722_v7 = vld [vmem:[%s3938_s8 + $0x10] sm:$0xff]   ;;  %vm1068_vm1 = vcmask 261120   ;;  %vm1599_vm4 = vcmask 130048  }
  0xd2   : > { %2486 = vmatprep.subr.bf16.mxu1 %v3124_v2  ;;  %2488 = vmatprep.mubr.msk.bf16.mxu1 %vm3125_vm0, %v3124_v2  ;;  %v2724_v9 = vld [vmem:[%s3938_s8 + $0x20] sm:$0xff]   ;;  %v2725_v10 = vld [vmem:[%s3938_s8 + $0x28] sm:$0xff]   ;;  %v2726_v11 = vld [vmem:[%s3938_s8 + $0x30] sm:$0xff]   ;;  %s4016_s21 = sld [smem:[#allocation39_spill]]  ;;  %s3126_s18 = smov [#allocation13]  }
  0xd3   : > { %s2265_s26 = sshll.u32 %s3457_s20, 3  ;;  %2460 = vmatprep.mubr.msk.bf16.mxu0 %vm3125_vm0, %v3124_v2  ;;  %2445 = vmatpush3.bf16.msra.mxu0 %v2720_v5  ;;  %v2727_v12 = vld [vmem:[%s3938_s8 + $0x38] sm:$0xff]   ;;  %v2728_v14 = vld [vmem:[%s3937_s7] sm:$0xff]   ;;  %v2729_v15 = vld [vmem:[%s3937_s7 + $0x8] sm:$0xff]   ;;  %s3007_s5 = sshll.u32 %s3126_s18, 4  ;;  %s3008_s5 = int_to_ptr.vmem [resolvable:$false] %s3007_s5 }
  0xd4   : > { %2446 = vmatprep.subr.bf16.mxu0 %v3124_v2  ;;  %v2730_v16 = vld [vmem:[%s3937_s7 + $0x10] sm:$0xff]   ;;  %v2731_v17 = vld [vmem:[%s3937_s7 + $0x18] sm:$0xff]   ;;  %v2732_v18 = vld [vmem:[%s3937_s7 + $0x20] sm:$0xff]  }
  0xd5   : > { %s801_s1 = scalar_lea.vmem %s4009_s2, %s2265_s26  ;;  %2487 = vmatpush3.bf16.msra.mxu1 %v2719_v4  ;;  %v2733_v19 = vld [vmem:[%s3937_s7 + $0x28] sm:$0xff]   ;;  %v2734_v20 = vld [vmem:[%s3937_s7 + $0x30] sm:$0xff]   ;;  %v2735_v21 = vld [vmem:[%s3937_s7 + $0x38] sm:$0xff]   ;;  %s4011_s26 = sld [smem:[#allocation29_spill]] }
  0xd6   : > { %v1021_v1 = vld [vmem:[%s801_s1] sm:$0xff]  ;;  %s2263_s1 = sshll.u32 %s3457_s20, 2  ;;  %v2737_v24 = vld [vmem:[%s3939_s9 + $0x8] sm:$0xff]   ;;  %v2738_v25 = vld [vmem:[%s3939_s9 + $0x10] sm:$0xff]   ;;  %s3757_s2 = sand.u32 1, %s3105_s28  }
  0xd7   : > { %1025 = vperm.xlu0 %2717, %v1021_v1   ;;  %2447 = vmatpush3.bf16.msra.mxu0 %v2721_v6  ;;  %s797_s29 = scalar_lea.vmem %s4010_s19, %s2263_s1  ;;  %v2736_v23 = vld [vmem:[%s3939_s9] sm:$0xff]   ;;  %v2739_v26 = vld [vmem:[%s3939_s9 + $0x18] sm:$0xff]   ;;  %v2741_v35 = vld [vmem:[%s3939_s9 + $0x28] sm:$0xff]   ;;  %s2261_s24 = sshll.u32 %s3757_s2, 3 }
  0xd8   : > { %2448 = vmatprep.subr.bf16.mxu0 %v3124_v2  ;;  %v804_v13 = vld [vmem:[%s797_s29] sm:$0xf]  ;;  %v2742_v36 = vld [vmem:[%s3939_s9 + $0x30] sm:$0xff]   ;;  %v2743_v37 = vld [vmem:[%s3939_s9 + $0x38] sm:$0xff]   ;;  %s4014_s20 = sld [smem:[#allocation27_spill]]  ;;  %s4015_s19 = sld [smem:[#allocation36_spill]] }
  0xd9   : > { %v2283_v27 = vld [vmem:[%s4012_s25] ss:$0 sm:$0xff]  ;;  %v2746_v39 = vld [vmem:[%s3941_s11 + $0x4] ss:$12 sps:$4 sm:$0xff]   ;;  %v2749_v40 = vld [vmem:[%s3941_s11 + $0x1c] ss:$12 sps:$4 sm:$0xff]  }
  0xda   : > { %v2284_v28 = vld [vmem:[#allocation2] ss:$0 sm:$0xff]  ;;  %1381 = vmatprep.subr.bf16.mxu1 %v2746_v39  ;;  %v2747_v41 = vld [vmem:[%s3941_s11 + $0x18] ss:$12 sps:$4 sm:$0xff]   ;;  %v2750_v43 = vld [vmem:[%s3941_s11 + $0x30] ss:$12 sps:$4 sm:$0xff]  }
  0xdb   : > { %2449 = vmatpush3.bf16.msra.mxu0 %v2722_v7  ;;  %s793_s0 = scalar_lea.vmem %s4011_s26, %s2263_s1  ;;  %v2740_v34 = vld [vmem:[%s3939_s9 + $0x20] sm:$0xff]   ;;  %v2755_v44 = vld [vmem:[%s3941_s11 + $0x4c] ss:$12 sps:$4 sm:$0xff]   ;;  %v2753_v45 = vld [vmem:[%s3941_s11 + $0x48] ss:$12 sps:$4 sm:$0xff]   ;;  %s3765_s1 = scalar_lea.vmem [#allocation13], %s2261_s24 }
  0xdc   : > { %2450 = vmatprep.subr.bf16.mxu0 %v3124_v2  ;;  %v803_v22 = vld [vmem:[%s793_s0] sm:$0xf]  ;;  %v2758_v46 = vld [vmem:[%s3941_s11 + $0x64] ss:$12 sps:$4 sm:$0xff]   ;;  %v2761_v48 = vld [vmem:[%s3941_s11 + $0x7c] ss:$12 sps:$4 sm:$0xff]  }
  0xdd   : > { %v2744_v38 = vld [vmem:[%s3941_s11] ss:$12 sps:$4 sm:$0xff]   ;;  %v2759_v49 = vld [vmem:[%s3941_s11 + $0x78] ss:$12 sps:$4 sm:$0xff]   ;;  %v2762_v51 = vld [vmem:[%s3941_s11 + $0x90] ss:$12 sps:$4 sm:$0xff]  }
  0xde   : > { %v2752_v42 = vld [vmem:[%s3941_s11 + $0x34] ss:$12 sps:$4 sm:$0xff]   ;;  %v2285_v52 = vld [vmem:[#allocation7] ss:$0 sm:$0xff]  ;;  %v2767_v60 = vld [vmem:[%s3941_s11 + $0xac] ss:$12 sps:$4 sm:$0xff]  }
  0xdf   : > { %2451 = vmatpush3.bf16.msra.mxu0 %v2723_v8  ;;  %v2756_v47 = vld [vmem:[%s3941_s11 + $0x60] ss:$12 sps:$4 sm:$0xff]   ;;  %v2765_v61 = vld [vmem:[%s3941_s11 + $0xa8] ss:$12 sps:$4 sm:$0xff]   ;;  %s4013_s0 = sld [smem:[#allocation37_spill]]  ;;  %s3971_s29 = sshll.u32 %s3264_s4, 7 }
  0xe0   : > { %2452 = vmatprep.subr.bf16.mxu0 %v3124_v2  ;;  %v2764_v50 = vld [vmem:[%s3941_s11 + $0x94] ss:$12 sps:$4 sm:$0xff]   ;;  %s3855_s6 = scalar_lea.hbm %s4016_s21, %s3971_s29  ;;  %s2057_s26 = sshll.u32 %s3765_s1, 4  ;;  %s2058_s26 = int_to_ptr.vmem [resolvable:$true] %s2057_s26 }
  0xe1   : > { %v2282_v62 = vld [vmem:[#allocation8] ss:$0 sm:$0xff]  ;;  %v2769_v8 = vld [vmem:[%s3941_s11 + $0x20] ss:$12 sps:$4 sm:$0xff]   ;;  %s2039_s3 = scalar_lea.sflag [#allocation4], %s3757_s2  ;;  %s3003_s27 = scalar_lea.vmem %s2058_s26, 128 }
  0xe2   : > { %p3004_p13 = scmp.ne.s32.totalorder %s2058_s26, %s3003_s27  ;;  %p4017_p1 = scmp.ne.s32.totalorder %s4014_s20, 0 }
  0xe3   : > { %2453 = vmatpush3.bf16.msra.mxu0 %v2724_v9  ;;  %v2770_v9 = vld [vmem:[%s3941_s11 + $0x38] ss:$12 sps:$4 sm:$0xff]   ;;  %p3010_p5 = scmp.lt.s32.totalorder %s2058_s26, %s3008_s5 }
  0xe4   : > { %2454 = vmatprep.subr.bf16.mxu0 %v3124_v2  ;;  %p3005_p6 = pnand %p3004_p13, %p4017_p1 }
  0xe6   : > { %p3006_p9 = pneg %p3005_p6 }
  0xe7   : > { %2455 = vmatpush3.bf16.msra.mxu0 %v2725_v10  ;;  %v2771_v10 = vld [vmem:[%s3941_s11 + $0x50] ss:$12 sps:$4 sm:$0xff]  }
  0xe8   : > { %2456 = vmatprep.subr.bf16.mxu0 %v3124_v2 }
  0xeb   : > { %2457 = vmatpush3.bf16.msra.mxu0 %v2726_v11  ;;  %v2772_v11 = vld [vmem:[%s3941_s11 + $0x68] ss:$12 sps:$4 sm:$0xff]  }
  0xec   : > { %2458 = vmatprep.subr.bf16.mxu0 %v3124_v2 }
  0xef   : > { %2459 = vmatpush3.bf16.msra.mxu0 %v2727_v12  ;;  %v2773_v12 = vld [vmem:[%s3941_s11 + $0x80] ss:$12 sps:$4 sm:$0xff]  }
  0xf0   : > { %2464 = vmatprep.subr.bf16.mxu0 %v3124_v2 }
  0xf2   : > { %2461 = vmatmul.mubr.bf16.vlgmr.msra.gmra.mrb[0].mxu0 %v804_v13  ;;  %v2774_v13 = vld [vmem:[%s3941_s11 + $0x98] ss:$12 sps:$4 sm:$0xff]  }
  0xf3   : > { %2465 = vmatpush3.bf16.msra.mxu0 %v2728_v14  ;;  %2480 = vmatprep.mubr.msk.bf16.mxu0 %vm3125_vm0, %v3124_v2  ;;  %v2775_v14 = vld [vmem:[%s3941_s11 + $0xb0] ss:$12 sps:$4 sm:$0xff]  }
  0xf4   : > { %2466 = vmatprep.subr.bf16.mxu0 %v3124_v2 }
  0xf7   : > { %2467 = vmatpush3.bf16.msra.mxu0 %v2729_v15  ;;  %v2776_v15 = vld [vmem:[%s3943_s13] sm:$0xff]  }
  0xf8   : > { %2468 = vmatprep.subr.bf16.mxu0 %v3124_v2 }
  0xfb   : > { %2469 = vmatpush3.bf16.msra.mxu0 %v2730_v16  ;;  %v2777_v16 = vld [vmem:[%s3943_s13 + $0x8] sm:$0xff]  }
  0xfc   : > { %2470 = vmatprep.subr.bf16.mxu0 %v3124_v2 }
  0xff   : > { %2471 = vmatpush3.bf16.msra.mxu0 %v2731_v17  ;;  %v2778_v17 = vld [vmem:[%s3943_s13 + $0x10] sm:$0xff]  }
 0x100   : > { %2472 = vmatprep.subr.bf16.mxu0 %v3124_v2 }
 0x103   : > { %2473 = vmatpush3.bf16.msra.mxu0 %v2732_v18  ;;  %v2779_v18 = vld [vmem:[%s3943_s13 + $0x18] sm:$0xff]  }
 0x104   : > { %2474 = vmatprep.subr.bf16.mxu0 %v3124_v2 }
 0x107   : > { %2475 = vmatpush3.bf16.msra.mxu0 %v2733_v19  ;;  %v2780_v19 = vld [vmem:[%s3943_s13 + $0x20] sm:$0xff]  }
 0x108   : > { %2476 = vmatprep.subr.bf16.mxu0 %v3124_v2 }
 0x10b   : > { %2477 = vmatpush3.bf16.msra.mxu0 %v2734_v20  ;;  %v2781_v20 = vld [vmem:[%s3943_s13 + $0x28] sm:$0xff]  }
 0x10c   : > { %2478 = vmatprep.subr.bf16.mxu0 %v3124_v2 }
 0x10f   : > { %2479 = vmatpush3.bf16.msra.mxu0 %v2735_v21  ;;  %v2782_v21 = vld [vmem:[%s3943_s13 + $0x30] sm:$0xff]  }
 0x110   : > { %2492 = vmatprep.subr.bf16.mxu0 %v3124_v2 }
 0x112   : > { %2481 = vmatmul.mubr.bf16.vlgmr.msra.gmra.mrb[0].mxu0 %v803_v22  ;;  %v2783_v22 = vld [vmem:[%s3943_s13 + $0x38] sm:$0xff]  }
 0x113   : > { %2493 = vmatpush3.bf16.msra.mxu0 %v2736_v23  ;;  %2508 = vmatprep.mubr.msk.bf16.mxu0 %vm3125_vm0, %v3124_v2  ;;  %v1463_v23 = vlaneseq }
 0x114   : > { %2494 = vmatprep.subr.bf16.mxu0 %v3124_v2 }
 0x117   : > { %2495 = vmatpush3.bf16.msra.mxu0 %v2737_v24  ;;  %v3702_v24 = vshrl.u32 %v1463_v23, 7  ;;  %v2817_v23 = vld [vmem:[%s4013_s0] sm:$0xff]  }
 0x118   : > { %2496 = vmatprep.subr.bf16.mxu0 %v3124_v2 }
 0x119   : > { %vm1465_vm2 = vcmp.ge.s32.totalorder %v3702_v24, 2  ;;  %vm1468_vm3 = vcmp.ge.s32.totalorder %v3702_v24, 1  ;;  %vm1907_vm5 = vcmp.lt.s32.totalorder %v3702_v24, 7 }
 0x11b   : > { %2497 = vmatpush3.bf16.msra.mxu0 %v2738_v25 }
 0x11c   : > { %2498 = vmatprep.subr.bf16.mxu0 %v3124_v2 }
 0x11f   : > { %2499 = vmatpush3.bf16.msra.mxu0 %v2739_v26 }
 0x120   : > { %2500 = vmatprep.subr.bf16.mxu0 %v3124_v2 }
 0x123   : > { %2501 = vmatpush3.bf16.msra.mxu0 %v2740_v34 }
 0x124   : > { %2502 = vmatprep.subr.bf16.mxu0 %v3124_v2 }
 0x127   : > { %2503 = vmatpush3.bf16.msra.mxu0 %v2741_v35  ;;  %v2321_v35 = vld [vmem:[#allocation10] ss:$0 sm:$0xff] }
 0x128   : > { %2504 = vmatprep.subr.bf16.mxu0 %v3124_v2 }
 0x12b   : > { %2505 = vmatpush3.bf16.msra.mxu0 %v2742_v36 }
 0x12c   : > { %2506 = vmatprep.subr.bf16.mxu0 %v3124_v2 }
 0x12f   : > { %2507 = vmatpush3.bf16.msra.mxu0 %v2743_v37 }
 0x156   : > { %v1026_v29 = vpop.permute.xlu0 %1025 }
 0x157   : > { %v1034_v30 = vmul.f32 %v2283_v27, %v1026_v29 }
 0x159   : > { %v1042_v31 = vadd.f32 %v2284_v28, %v1034_v30 }
 0x15b   : > { %v1043_v32 = vmax.f32 %v1042_v31, 0.0 }
 0x15d   : > { %v1048_v33 = vpack.c.bf16 %v1043_v32, %v1043_v32 }
 0x15f   : > { %2489 = vmatmul.mubr.msk.bf16.vlgmr.msra.gmra.mrb[0].mxu1 %vm1068_vm1, %v1048_v33 }
 0x160   : > { %1413 = vmatprep.mubr.bf16.mxu1 %v3123_v0  ;;  %1382 = vmatpush1.bf16.msra.mxu1 %v2744_v38 }
 0x161   : > { %1383 = vmatprep.subr.bf16.mxu1 %v2749_v40 }
 0x164   : > { %1384 = vmatpush1.bf16.msra.mxu1 %v2747_v41 }
 0x165   : > { %1385 = vmatprep.subr.bf16.mxu1 %v2752_v42 }
 0x168   : > { %1386 = vmatpush1.bf16.msra.mxu1 %v2750_v43  ;;  %v2784_v43 = vld [vmem:[%s3945_s15] sm:$0xff]  }
 0x169   : > { %1387 = vmatprep.subr.bf16.mxu1 %v2755_v44  ;;  %v2785_v44 = vld [vmem:[%s3947_s17] ss:$12 sps:$4 sm:$0xff]  }
 0x16c   : > { %1388 = vmatpush1.bf16.msra.mxu1 %v2753_v45  ;;  %v2787_v45 = vld [vmem:[%s3947_s17 + $0x4] ss:$12 sps:$4 sm:$0xff]  }
 0x16d   : > { %1389 = vmatprep.subr.bf16.mxu1 %v2758_v46  ;;  %v2791_v46 = vld [vmem:[%s3947_s17 + $0x1c] ss:$12 sps:$4 sm:$0xff]   ;;  %1822 = vmatprep.subr.bf16.mxu0 %v2787_v45  ;;  %v2359_v45 = vld [vmem:[%s4015_s19] ss:$0 sm:$0xff]  ;;  %s3009_s19 = scalar_lea.vmem %s3008_s5, 256 }
 0x16e   : > { %p3011_p10 = scmp.lt.s32.totalorder %s3009_s19, %s3003_s27 }
 0x170   : > { %1390 = vmatpush1.bf16.msra.mxu1 %v2756_v47  ;;  %v2789_v47 = vld [vmem:[%s3947_s17 + $0x18] ss:$12 sps:$4 sm:$0xff]   ;;  %p3012_p0 = por %p3011_p10, %p3010_p5 }
 0x171   : > { %1391 = vmatprep.subr.bf16.mxu1 %v2761_v48  ;;  %v2795_v48 = vld [vmem:[%s3947_s17 + $0x34] ss:$12 sps:$4 sm:$0xff]  }
 0x172   : > { %p3013_p2 = pnand %p3012_p0, %p3006_p9 }
 0x174   : > { %1392 = vmatpush1.bf16.msra.mxu1 %v2759_v49  ;;  %v2793_v49 = vld [vmem:[%s3947_s17 + $0x30] ss:$12 sps:$4 sm:$0xff]  }
 0x175   : > { %1393 = vmatprep.subr.bf16.mxu1 %v2764_v50  ;;  %v2799_v50 = vld [vmem:[%s3947_s17 + $0x4c] ss:$12 sps:$4 sm:$0xff]  }
 0x178   : > { %1394 = vmatpush1.bf16.msra.mxu1 %v2762_v51  ;;  %v2797_v51 = vld [vmem:[%s3947_s17 + $0x48] ss:$12 sps:$4 sm:$0xff]  }
 0x179   : > { %1395 = vmatprep.subr.bf16.mxu1 %v2767_v60 }
 0x17c   : > { %1396 = vmatpush1.bf16.msra.mxu1 %v2765_v61 }
 0x17d   : > { %2512 = vmatprep.subr.bf16.mxu1 %v3124_v2 }
 0x232   : > { %v1106_v53 = vpop.f32.mrb[0].mxu1 }
 0x233   : > { %v1107_v54 = vadd.f32 %v2285_v52, %v1106_v53  ;;  %v2490_v55 = vpop.f32.mrb[1].mxu1  ;;  %v2803_v52 = vld [vmem:[%s3947_s17 + $0x64] ss:$12 sps:$4 sm:$0xff]   ;;  %v2801_v53 = vld [vmem:[%s3947_s17 + $0x60] ss:$12 sps:$4 sm:$0xff]  }
 0x234   : > { %v1109_v56 = vpop.f32.mrb[2].mxu1  ;;  %v2805_v55 = vld [vmem:[%s3947_s17 + $0x78] ss:$12 sps:$4 sm:$0xff]  }
 0x235   : > { %2825 = vtanh.f32 %v1107_v54  ;;  %v2491_v57 = vpop.f32.mrb[3].mxu1  ;;  %v2807_v54 = vld [vmem:[%s3947_s17 + $0x7c] ss:$12 sps:$4 sm:$0xff]   ;;  %v2811_v56 = vld [vmem:[%s3947_s17 + $0x94] ss:$12 sps:$4 sm:$0xff]  }
 0x236   : > { %v2809_v57 = vld [vmem:[%s3947_s17 + $0x90] ss:$12 sps:$4 sm:$0xff]  }
 0x23f   : > { %v2826_v58 = vpop.eup %2825 }
 0x240   : > { %v1129_v59 = vpack.c.bf16 %v2826_v58, %v2826_v58  ;;  %v2322_v58 = vld [vmem:[#allocation11] ss:$0 sm:$0xff] }
 0x242   : > { %2509 = vmatmul.mubr.bf16.vlgmr.msra.gmra.mrb[0].mxu0 %v1129_v59 }
 0x243   : > { %1854 = vmatprep.mubr.bf16.mxu0 %v3123_v0  ;;  %v2768_v0 = vld [vmem:[%s3941_s11 + $0x8] ss:$12 sps:$4 sm:$0xff]   ;;  %1823 = vmatpush1.bf16.msra.mxu0 %v2785_v44 }
 0x244   : > { %1824 = vmatprep.subr.bf16.mxu0 %v2791_v46 }
 0x247   : > { %1825 = vmatpush1.bf16.msra.mxu0 %v2789_v47 }
 0x248   : > { %1826 = vmatprep.subr.bf16.mxu0 %v2795_v48 }
 0x24b   : > { %1827 = vmatpush1.bf16.msra.mxu0 %v2793_v49 }
 0x24c   : > { %1828 = vmatprep.subr.bf16.mxu0 %v2799_v50 }
 0x24f   : > { %1829 = vmatpush1.bf16.msra.mxu0 %v2797_v51 }
 0x250   : > { %1830 = vmatprep.subr.bf16.mxu0 %v2803_v52 }
 0x253   : > { %1831 = vmatpush1.bf16.msra.mxu0 %v2801_v53 }
 0x254   : > { %1832 = vmatprep.subr.bf16.mxu0 %v2807_v54 }
 0x257   : > { %1833 = vmatpush1.bf16.msra.mxu0 %v2805_v55 }
 0x258   : > { %1834 = vmatprep.subr.bf16.mxu0 %v2811_v56 }
 0x25b   : > { %1835 = vmatpush1.bf16.msra.mxu0 %v2809_v57 }
 0x315   : > { %v1212_v63 = vpop.f32.mrb[0].mxu0 }
 0x316   : > { %v2598_v1 = vadd.f32 %v2282_v62, %v1212_v63  ;;  %v2510_v3 = vpop.f32.mrb[1].mxu0 }
 0x317   : > { %v1215_v4 = vpop.f32.mrb[2].mxu0 }
 0x318   : > { %v1219_v5 = vmax.f32 %v2598_v1, 0.0  ;;  %v2511_v6 = vpop.f32.mrb[3].mxu0 }
 0x319   : > { %v2788_v6 = vld [vmem:[%s3947_s17 + $0x8] ss:$12 sps:$4 sm:$0xff]  }
 0x31a   : > { %v1252_v7 = vpack.c.bf16 %v1219_v5, %v1219_v5 }
 0x31c   : > { %1414 = vmatmul.mubr.bf16.vlgmr.msra.gmra.mrb[4].mxu1 %v1252_v7 }
 0x31d   : > { %2513 = vmatpush3.bf16.msra.mxu1 %v2768_v0  ;;  %2528 = vmatprep.mubr.msk.bf16.mxu1 %vm3125_vm0, %v3124_v2 }
 0x31e   : > { %2514 = vmatprep.subr.bf16.mxu1 %v3124_v2 }
 0x321   : > { %2515 = vmatpush3.bf16.msra.mxu1 %v2769_v8  ;;  %v2796_v8 = vld [vmem:[%s3947_s17 + $0x38] ss:$12 sps:$4 sm:$0xff]  }
 0x322   : > { %2516 = vmatprep.subr.bf16.mxu1 %v3124_v2 }
 0x325   : > { %2517 = vmatpush3.bf16.msra.mxu1 %v2770_v9  ;;  %v2800_v9 = vld [vmem:[%s3947_s17 + $0x50] ss:$12 sps:$4 sm:$0xff]  }
 0x326   : > { %2518 = vmatprep.subr.bf16.mxu1 %v3124_v2 }
 0x329   : > { %2519 = vmatpush3.bf16.msra.mxu1 %v2771_v10  ;;  %v2804_v10 = vld [vmem:[%s3947_s17 + $0x68] ss:$12 sps:$4 sm:$0xff]  }
 0x32a   : > { %2520 = vmatprep.subr.bf16.mxu1 %v3124_v2 }
 0x32d   : > { %2521 = vmatpush3.bf16.msra.mxu1 %v2772_v11  ;;  %v2808_v11 = vld [vmem:[%s3947_s17 + $0x80] ss:$12 sps:$4 sm:$0xff]  }
 0x32e   : > { %2522 = vmatprep.subr.bf16.mxu1 %v3124_v2 }
 0x331   : > { %2523 = vmatpush3.bf16.msra.mxu1 %v2773_v12  ;;  %v2812_v12 = vld [vmem:[%s3947_s17 + $0x98] ss:$12 sps:$4 sm:$0xff]  }
 0x332   : > { %2524 = vmatprep.subr.bf16.mxu1 %v3124_v2 }
 0x335   : > { %2525 = vmatpush3.bf16.msra.mxu1 %v2774_v13  ;;  %v2815_v13 = vld [vmem:[%s3947_s17 + $0xac] ss:$12 sps:$4 sm:$0xff]  }
 0x336   : > { %2526 = vmatprep.subr.bf16.mxu1 %v3124_v2  ;;  %1836 = vmatprep.subr.bf16.mxu0 %v2815_v13 }
 0x339   : > { %2527 = vmatpush3.bf16.msra.mxu1 %v2775_v14  ;;  %v2813_v14 = vld [vmem:[%s3947_s17 + $0xa8] ss:$12 sps:$4 sm:$0xff]  }
 0x33a   : > { %2532 = vmatprep.subr.bf16.mxu1 %v3124_v2  ;;  %1837 = vmatpush1.bf16.msra.mxu0 %v2813_v14 }
 0x33b   : > { %2578 = vmatprep.subr.bf16.mxu0 %v3124_v2 }
 0x33c   : > { %2529 = vmatmul.mubr.bf16.vlgmr.msra.gmra.mrb[8].mxu1 %v1252_v7  ;;  %v2792_v7 = vld [vmem:[%s3947_s17 + $0x20] ss:$12 sps:$4 sm:$0xff]  }
 0x33d   : > { %2548 = vmatprep.mubr.msk.bf16.mxu1 %vm3125_vm0, %v3124_v2  ;;  %2533 = vmatpush3.bf16.msra.mxu1 %v2776_v15  ;;  %v2816_v15 = vld [vmem:[%s3947_s17 + $0xb0] ss:$12 sps:$4 sm:$0xff]  }
 0x33e   : > { %2534 = vmatprep.subr.bf16.mxu1 %v3124_v2 }
 0x341   : > { %2535 = vmatpush3.bf16.msra.mxu1 %v2777_v16  ;;  %v2332_v16 = vld [vmem:[%s3946_s16] ss:$0 sm:$0xff] }
 0x342   : > { %2536 = vmatprep.subr.bf16.mxu1 %v3124_v2 }
 0x345   : > { %2537 = vmatpush3.bf16.msra.mxu1 %v2778_v17 }
 0x346   : > { %2538 = vmatprep.subr.bf16.mxu1 %v3124_v2 }
 0x349   : > { %2539 = vmatpush3.bf16.msra.mxu1 %v2779_v18 }
 0x34a   : > { %2540 = vmatprep.subr.bf16.mxu1 %v3124_v2 }
 0x34d   : > { %2541 = vmatpush3.bf16.msra.mxu1 %v2780_v19 }
 0x34e   : > { %2542 = vmatprep.subr.bf16.mxu1 %v3124_v2 }
 0x351   : > { %2543 = vmatpush3.bf16.msra.mxu1 %v2781_v20 }
 0x352   : > { %2544 = vmatprep.subr.bf16.mxu1 %v3124_v2 }
 0x355   : > { %2545 = vmatpush3.bf16.msra.mxu1 %v2782_v21 }
 0x356   : > { %2546 = vmatprep.subr.bf16.mxu1 %v3124_v2 }
 0x359   : > { %2547 = vmatpush3.bf16.msra.mxu1 %v2783_v22 }
 0x35a   : > { %2552 = vmatprep.subr.bf16.mxu1 %v3124_v2 }
 0x3ef   : > { %v1415_v25 = vpop.f32.mrb[4].mxu1 }
 0x3f0   : > { %v1462_v26 = vrot.slane %v1415_v25, 6  ;;  %v1417_v27 = vpop.f32.mrb[5].mxu1 }
 0x3f1   : > { %v1467_v28 = vrot.slane %v1417_v27, 7  ;;  %v1419_v29 = vpop.f32.mrb[6].mxu1  ;;  %v2819_v27 = vld [vmem:[%s4013_s0 + $0x10] sm:$0xff]  }
 0x3f2   : > { %v1466_v30 = vsel %vm1465_vm2, %v1462_v26, 0.0  ;;  %v1420_v31 = vpop.f32.mrb[7].mxu1  ;;  %v2818_v26 = vld [vmem:[%s4013_s0 + $0x8] sm:$0xff]   ;;  %v2821_v29 = vld [vmem:[%s4013_s0 + $0x20] sm:$0xff]  }
 0x3f3   : > { %v1469_v32 = vsel %vm1468_vm3, %v1467_v28, 0.0  ;;  %v2820_v28 = vld [vmem:[%s4013_s0 + $0x18] sm:$0xff]   ;;  %v2823_v31 = vld [vmem:[%s4013_s0 + $0x30] sm:$0xff]  }
 0x3f4   : > { %v1470_v33 = vadd.f32 %v1469_v32, %v1466_v30  ;;  %v2822_v30 = vld [vmem:[%s4013_s0 + $0x28] sm:$0xff]   ;;  %v2824_v32 = vld [vmem:[%s4013_s0 + $0x38] sm:$0xff]  }
 0x40f   : > { %v1456_v34 = vpop.f32.mrb[8].mxu1 }
 0x410   : > { %v1471_v36 = vadd.f32 %v1470_v33, %v1456_v34  ;;  %v2530_v37 = vpop.f32.mrb[9].mxu1 }
 0x411   : > { %v1459_v38 = vpop.f32.mrb[10].mxu1 }
 0x412   : > { %v1479_v39 = vadd.f32 %v2321_v35, %v1471_v36  ;;  %v2531_v40 = vpop.f32.mrb[11].mxu1 }
 0x414   : > { %v1480_v41 = vmax.f32 %v1479_v39, 0.0 }
 0x416   : > { %v1497_v42 = vpack.c.bf16 %v1480_v41, %v1480_v41 }
 0x418   : > { %2549 = vmatmul.mubr.bf16.vlgmr.msra.gmra.mrb[12].mxu1 %v1497_v42 }
 0x419   : > { %2554 = vmatprep.mubr.msk.bf16.mxu1 %vm3125_vm0, %v3124_v2  ;;  %2553 = vmatpush3.bf16.msra.mxu1 %v2784_v43 }
 0x41a   : > { %2558 = vmatprep.subr.bf16.mxu1 %v3124_v2 }
 0x4eb   : > { %v1587_v59 = vpop.f32.mrb[12].mxu1 }
 0x4ec   : > { %v1588_v60 = vadd.f32 %v2322_v58, %v1587_v59  ;;  %v2550_v61 = vpop.f32.mrb[13].mxu1 }
 0x4ed   : > { %v1590_v62 = vpop.f32.mrb[14].mxu1 }
 0x4ee   : > { %v2331_v63 = vmul.f32 -1.442695, %v1588_v60  ;;  %v2551_v1 = vpop.f32.mrb[15].mxu1 }
 0x4f0   : > { %2827 = vpow2.f32 %v2331_v63 }
 0x4fa   : > { %v2828_v3 = vpop.eup %2827 }
 0x4fb   : > { %v1596_v4 = vadd.f32 1.0, %v2828_v3 }
 0x4fd   : > { %2829 = vrcp.f32 %v1596_v4 }
 0x507   : > { %v2830_v5 = vpop.eup %2829 }
 0x508   : > { %v1603_v0 = vpack.c.bf16 %v2830_v5, %v2830_v5  ;;  %1600 = vst.msk [vmem:[%s3765_s1] sm:$0xff] %vm1599_vm4, %v2830_v5 }
 0x50a   : > { %2555 = vmatmul.mubr.msk.bf16.vlgmr.msra.gmra.mrb[16].mxu1 %vm1599_vm4, %v1603_v0 }
 0x50b   : > { %2559 = vmatpush3.bf16.msra.mxu1 %v2788_v6  ;;  %2574 = vmatprep.mubr.msk.bf16.mxu1 %vm3125_vm0, %v3124_v2 }
 0x50c   : > { %2560 = vmatprep.subr.bf16.mxu1 %v3124_v2 }
 0x50f   : > { %2561 = vmatpush3.bf16.msra.mxu1 %v2792_v7 }
 0x510   : > { %2562 = vmatprep.subr.bf16.mxu1 %v3124_v2 }
 0x513   : > { %2563 = vmatpush3.bf16.msra.mxu1 %v2796_v8 }
 0x514   : > { %2564 = vmatprep.subr.bf16.mxu1 %v3124_v2 }
 0x517   : > { %2565 = vmatpush3.bf16.msra.mxu1 %v2800_v9 }
 0x518   : > { %2566 = vmatprep.subr.bf16.mxu1 %v3124_v2 }
 0x51b   : > { %2567 = vmatpush3.bf16.msra.mxu1 %v2804_v10 }
 0x51c   : > { %2568 = vmatprep.subr.bf16.mxu1 %v3124_v2 }
 0x51f   : > { %2569 = vmatpush3.bf16.msra.mxu1 %v2808_v11 }
 0x520   : > { %2570 = vmatprep.subr.bf16.mxu1 %v3124_v2 }
 0x523   : > { %2571 = vmatpush3.bf16.msra.mxu1 %v2812_v12 }
 0x524   : > { %2572 = vmatprep.subr.bf16.mxu1 %v3124_v2 }
 0x527   : > { %2573 = vmatpush3.bf16.msra.mxu1 %v2816_v15 }
 0x5dd   : > { %v1654_v17 = vpop.f32.mrb[16].mxu1 }
 0x5de   : > { %v1655_v18 = vadd.f32 %v2332_v16, %v1654_v17  ;;  %v2556_v19 = vpop.f32.mrb[17].mxu1 }
 0x5df   : > { %v1657_v20 = vpop.f32.mrb[18].mxu1 }
 0x5e0   : > { %v1660_v21 = vmax.f32 %v1655_v18, 0.0  ;;  %v2557_v22 = vpop.f32.mrb[19].mxu1 }
 0x5e2   : > { %v1693_v25 = vpack.c.bf16 %v1660_v21, %v1660_v21 }
 0x5e4   : > { %1855 = vmatmul.mubr.bf16.vlgmr.msra.gmra.mrb[4].mxu0 %v1693_v25  ;;  %2575 = vmatmul.mubr.bf16.vlgmr.msra.gmra.mrb[20].mxu1 %v1693_v25 }
 0x5e5   : > { %2579 = vmatpush3.bf16.msra.mxu0 %v2817_v23  ;;  %2594 = vmatprep.mubr.msk.bf16.mxu0 %vm3125_vm0, %v3124_v2 }
 0x5e6   : > { %2580 = vmatprep.subr.bf16.mxu0 %v3124_v2 }
 0x5e9   : > { %2581 = vmatpush3.bf16.msra.mxu0 %v2818_v26 }
 0x5ea   : > { %2582 = vmatprep.subr.bf16.mxu0 %v3124_v2 }
 0x5ed   : > { %2583 = vmatpush3.bf16.msra.mxu0 %v2819_v27 }
 0x5ee   : > { %2584 = vmatprep.subr.bf16.mxu0 %v3124_v2 }
 0x5f1   : > { %2585 = vmatpush3.bf16.msra.mxu0 %v2820_v28 }
 0x5f2   : > { %2586 = vmatprep.subr.bf16.mxu0 %v3124_v2 }
 0x5f5   : > { %2587 = vmatpush3.bf16.msra.mxu0 %v2821_v29 }
 0x5f6   : > { %2588 = vmatprep.subr.bf16.mxu0 %v3124_v2 }
 0x5f9   : > { %2589 = vmatpush3.bf16.msra.mxu0 %v2822_v30 }
 0x5fa   : > { %2590 = vmatprep.subr.bf16.mxu0 %v3124_v2 }
 0x5fd   : > { %2591 = vmatpush3.bf16.msra.mxu0 %v2823_v31 }
 0x5fe   : > { %2592 = vmatprep.subr.bf16.mxu0 %v3124_v2 }
 0x601   : > { %2593 = vmatpush3.bf16.msra.mxu0 %v2824_v32 }
 0x6b7   : > { %v1856_v33 = vpop.f32.mrb[4].mxu0  ;;  %v1897_v34 = vpop.f32.mrb[20].mxu1 }
 0x6b8   : > { %v1903_v35 = vrot.slane %v1856_v33, 7  ;;  %v1906_v36 = vrot.slane %v1897_v34, 1  ;;  %v1858_v37 = vpop.f32.mrb[5].mxu0  ;;  %v2576_v38 = vpop.f32.mrb[21].mxu1 }
 0x6b9   : > { %v1860_v39 = vpop.f32.mrb[6].mxu0  ;;  %v1900_v40 = vpop.f32.mrb[22].mxu1 }
 0x6ba   : > { %v1904_v2 = vsel %vm1468_vm3, %v1903_v35, 0.0  ;;  %v1861_v41 = vpop.f32.mrb[7].mxu0  ;;  %v2577_v42 = vpop.f32.mrb[23].mxu1  ;;  %v1908_v44 = vsel %vm1907_vm5, %v1906_v36, 0.0 }
 0x6bb   : > { %v1905_v43 = vadd.f32 %v1904_v2, %v1858_v37 }
 0x6bd   : > { %v1909_v46 = vadd.f32 %v1908_v44, %v1905_v43 }
 0x6bf   : > { %v1917_v47 = vadd.f32 %v2359_v45, %v1909_v46 }
 0x6c1   : > { %v1918_v48 = vmax.f32 %v1917_v47, 0.0 }
 0x6c3   : > { %v1935_v49 = vpack.c.bf16 %v1918_v48, %v1918_v48 }
 0x6c5   : > { %2595 = vmatmul.mubr.bf16.vlgmr.msra.gmra.mrb[8].mxu0 %v1935_v49 }
 0x6c6   : > { %3016 = shalt.err (!%p3013_p2)
}
 0x6c7   : > { %s3017_s1 = scalar_lea.hbm %s3855_s6, 128  ;;  %s3021_s18 = scalar_lea.hbm %s4016_s21, 256 }
 0x6c8   : > { %p3018_p3 = scmp.ne.s32.totalorder %s3855_s6, %s3017_s1  ;;  %p3022_p7 = scmp.lt.u32.totalorder %s3855_s6, %s4016_s21 }
 0x6c9   : > { %p3023_p8 = scmp.lt.u32.totalorder %s3021_s18, %s3017_s1  ;;  %p3025_p13 = scmp.lt.u32.totalorder %s3017_s1, %s3855_s6 }
 0x6ca   : > { %p3019_p4 = pnand %p3018_p3, %p4017_p1 }
 0x6cb   : > { %p3024_p11 = por %p3023_p8, %p3022_p7 }
 0x6cc   : > { %p3020_p12 = pneg %p3019_p4 }
 0x6cd   : > { %p3026_p6 = por %p3025_p13, %p3024_p11 }
 0x6cf   : > { %p3027_p9 = pnand %p3026_p6, %p3020_p12 }
 0x6d1   : > { %3030 = shalt.err (!%p3027_p9)
}
 0x6d2   : > { %2631 = dma.vmem_to_hbm [thread:$0]  (%p4017_p1), %s2058_s26, 128, %s3855_s6, %s2039_s3  }
 0x6d3   : > { %s4018_s25 = sld [smem:[#allocation38_spill]]  ;;  %s789_s29 = scalar_lea.vmem [#allocation14], %s2261_s24 }
 0x6d4   : > { %s2070_s1 = sshll.u32 %s789_s29, 4  ;;  %s4019_s6 = sshll.u32 %s3264_s4, 7  ;;  %s3888_s1 = int_to_ptr.vmem [resolvable:$true] %s2070_s1 }
 0x6d5   : > { %s4020_s30 = sld [smem:[#allocation40_spill]]  ;;  %s2044_s27 = scalar_lea.sflag [#allocation15], %s3757_s2 }
 0x6d6   : > { %s3031_s19 = scalar_lea.vmem %s3888_s1, 128  ;;  %s3127_s4 = smov [#allocation14]  }
 0x6d7   : > { %p3032_p5 = scmp.ne.s32.totalorder %s3888_s1, %s3031_s19  ;;  %s3035_s24 = sshll.u32 %s3127_s4, 4  ;;  %s3036_s24 = int_to_ptr.vmem [resolvable:$false] %s3035_s24 }
 0x6d8   : > { %p3038_p2 = scmp.lt.s32.totalorder %s3888_s1, %s3036_s24 }
 0x6d9   : > { %v2360_v24 = vld [vmem:[%s4018_s25] ss:$0 sm:$0xff]  ;;  %p3033_p10 = pnand %p3032_p5, %p4017_p1  ;;  %s3037_s25 = scalar_lea.vmem %s3036_s24, 256 }
 0x6da   : > { %p3039_p3 = scmp.lt.s32.totalorder %s3037_s25, %s3031_s19 }
 0x6db   : > { %s4021_s18 = smov %s4020_s30  ;;  %s3886_s5 = scalar_lea.hbm %s4020_s30, %s4019_s6 }
 0x6dc   : > { %p3034_p0 = pneg %p3033_p10  ;;  %p3040_p4 = por %p3039_p3, %p3038_p2 }
 0x6de   : > { %p3041_p12 = pnand %p3040_p4, %p3034_p0 }
 0x798   : > { %v2025_v50 = vpop.f32.mrb[8].mxu0 }
 0x799   : > { %v2026_v51 = vadd.f32 %v2360_v24, %v2025_v50  ;;  %v2596_v52 = vpop.f32.mrb[9].mxu0 }
 0x79a   : > { %v2028_v53 = vpop.f32.mrb[10].mxu0 }
 0x79b   : > { %v2369_v54 = vmul.f32 -1.442695, %v2026_v51  ;;  %v2597_v55 = vpop.f32.mrb[11].mxu0 }
 0x79d   : > { %2831 = vpow2.f32 %v2369_v54 }
 0x7a7   : > { %v2832_v56 = vpop.eup %2831 }
 0x7a8   : > { %v2034_v57 = vadd.f32 1.0, %v2832_v56 }
 0x7aa   : > { %2833 = vrcp.f32 %v2034_v57 }
 0x7b4   : > { %v2834_v58 = vpop.eup %2833 }
 0x7b5   : > { %2037 = vst.msk [vmem:[%s789_s29] sm:$0xff] %vm1599_vm4, %v2834_v58 }
 0x7b6   : > { %3044 = shalt.err (!%p3041_p12)
}
 0x7b7   : > { %s3045_s2 = scalar_lea.hbm %s3886_s5, 128  ;;  %s3049_s26 = scalar_lea.hbm %s4021_s18, 256 }
 0x7b8   : > { %p3046_p7 = scmp.ne.s32.totalorder %s3886_s5, %s3045_s2  ;;  %p3050_p13 = scmp.lt.u32.totalorder %s3886_s5, %s4021_s18 }
 0x7b9   : > { %p3051_p6 = scmp.lt.u32.totalorder %s3049_s26, %s3045_s2  ;;  %p3053_p5 = scmp.lt.u32.totalorder %s3045_s2, %s3886_s5 }
 0x7ba   : > { %p3047_p8 = pnand %p3046_p7, %p4017_p1 }
 0x7bb   : > { %p3052_p9 = por %p3051_p6, %p3050_p13 }
 0x7bc   : > { %p3048_p11 = pneg %p3047_p8 }
 0x7bd   : > { %p3054_p10 = por %p3053_p5, %p3052_p9 }
 0x7bf   : > { %p3055_p0 = pnand %p3054_p10, %p3048_p11 }
 0x7c1   : > { %3058 = shalt.err (!%p3055_p0)
}
 0x7c2   : > { %2632 = dma.vmem_to_hbm [thread:$0]  (%p4017_p1), %s3888_s1, 128, %s3886_s5, %s2044_s27  }
 0x7c3 PF: > { %s4022_s19 = sld [smem:[#allocation24_spill]]  ;;  %s4023_s4 = sld [smem:[#allocation22_spill]] }
 0x7c4   : > { %s4024_s24 = sld [smem:[#allocation28_spill]] }
 0x7c9   : > { %p2673_p2 = scmp.ge.s32.totalorder %s4022_s19, 2  ;;  %s2082_s25 = sand.u32 1, %s4023_s4  }
 0x7ca   : > { %p4025_p3 = scmp.ne.s32.totalorder %s4024_s24, 0  ;;  %s2083_s29 = scalar_lea.sflag [#allocation4], %s2082_s25 }
 0x7cc   : > { %p2655_p4 = pnand %p2673_p2, %p4025_p3 }
 0x7ce   : > { %3092 = dma.done.wait (!%p2655_p4), %s2083_s29, 128  }
 0x7cf   : > { %3094 = vsyncadd (!%p2655_p4), %s2083_s29, 4294967168  ;;  %s2092_s2 = scalar_lea.sflag [#allocation15], %s2082_s25 }
 0x7d0   : > { %3096 = dma.done.wait (!%p2655_p4), %s2092_s2, 128  }
 0x7d1   : > { %3098 = vsyncadd (!%p2655_p4), %s2092_s2, 4294967168  ;;  %s4026_s30 = sld [smem:[#allocation25_spill]]  ;;  %s4027_s20 = sld [smem:[#allocation23_spill]] }
 0x7d2   : > { %s4028_s29 = sld [smem:[#allocation26_spill]]  ;;  %s4029_s3 = smov %s3105_s28 }
 0x7d7   : > { %p40_p1 = scmp.ge.s32.totalorder %s4026_s30, 4   ;;  %s4030_s28 = smov %s4027_s20 }
 0x7d9   :  { %42 = sbr.rel (!%p40_p1) target bundleno = 22 (0x16), region = 187 }
 0x7e0   :  { %2097 = vsyncpa [#allocation3], 1 }
 0x7e1   :  { %2099 = vsyncpa [#allocation3 + $0x1], 1 }
 0x7e2   :  { %2100 = vsyncpa [#allocation6], 1 }
 0x7e3   :  { %2101 = vsyncpa [#allocation9], 1 }
 0x7e4   :  { %2102 = vsyncpa [#allocation12], 1 }
 0x7e5   :  { %2103 = vsyncpa [#allocation4], 1 }
 0x7e6   :  { %2105 = vsyncpa [#allocation4 + $0x1], 1 }
 0x7e7   :  { %2106 = vsyncpa [#allocation15], 1 }
 0x7e8   :  { %2108 = vsyncpa [#allocation15 + $0x1], 1 }

</bundles_post_ra>
